<compile_context>
chip_gen: v5e
topology: v5e:2x2
jax: 0.10.0
libtpu: 0.0.40
codegen_flags: <defaults>
</compile_context>

<pallas_src>
import functools
import numpy as np
import jax
import jax.numpy as jnp
from jax import lax
from jax.experimental import pallas as pl
from jax.experimental.pallas import tpu as pltpu


# ----------------------------------------------------------------------------
# Fused Pallas kernel
# ----------------------------------------------------------------------------

def _make_fused_kernel(num_layers, num_head_layers, R, N):
    """Builds the fused kernel body for a fixed layer/head count."""

    def kernel(*refs):
        # refs = [A_flat, X, (W_eff, root, bias) * num_layers, P,
        #         (W, b) * num_head_layers, out]
        out_ref = refs[-1]
        a_flat = refs[0][...]                                   # [R*N, N]
        x = refs[1][...]                                        # [N, Cin0]
        idx = 2

        for _ in range(num_layers):
            w_ref, root_ref, bias_ref = refs[idx], refs[idx + 1], refs[idx + 2]
            idx += 3
            # Stage 1: all R per-relation mean aggregations as ONE stacked
            # MXU matmul:  H_flat[r*N + i, :] = sum_j A[r, i, j] * x[j, :]
            h_flat = jnp.dot(a_flat, x,
                             preferred_element_type=jnp.float32)     # [R*N, Cin]
            # Root transform + bias.
            acc = (jnp.dot(x, root_ref[...],
                           preferred_element_type=jnp.float32)
                   + bias_ref[...])                                   # [N, Cout]
            # Stage 2: per-relation transforms, unrolled as R small 2-D dots
            # on sublane-aligned static row slices (N is a multiple of 8).
            for r in range(R):
                acc = acc + jnp.dot(h_flat[r * N:(r + 1) * N, :], w_ref[r],
                                    preferred_element_type=jnp.float32)
            # TODO(synk): F.dropout is identity in inference mode, so it is skipped.
            x = jnp.maximum(acc, 0.0)

        # Mean graph readout as a matmul with the pooling matrix P [G, N].
        p_ref = refs[idx]
        idx += 1
        z = jnp.dot(p_ref[...], x, preferred_element_type=jnp.float32)   # [G, H]

        # 3-layer MLP head (ReLU between layers, none after the last).
        for li in range(num_head_layers):
            w_ref, b_ref = refs[idx], refs[idx + 1]
            idx += 2
            z = jnp.dot(z, w_ref[...], preferred_element_type=jnp.float32) + b_ref[...]
            if li < num_head_layers - 1:
                z = jnp.maximum(z, 0.0)

        out_ref[...] = z

    return kernel


def fused_forward(A_flat, X, layer_params, P, head_params, *, R, N):
    """One pallas_call for the whole forward. Everything resident in VMEM."""
    G = P.shape[0]
    inputs = [A_flat, X]
    for (w_eff, root, bias) in layer_params:
        inputs += [w_eff, root, bias]
    inputs.append(P)
    for (w, b) in head_params:
        inputs += [w, b]

    kernel = _make_fused_kernel(len(layer_params), len(head_params), R, N)
    vmem_spec = pl.BlockSpec(memory_space=pltpu.MemorySpace.VMEM)
    # Grid-less call: every array is a single whole-array VMEM block (total
    # working set < 1 MiB, far under the scoped VMEM limit on v5e/v6e/v7x).
    return pl.pallas_call(
        kernel,
        out_shape=jax.ShapeDtypeStruct((G, 1), jnp.float32),
        in_specs=[vmem_spec] * len(inputs),
        out_specs=vmem_spec,
    )(*inputs)


# ----------------------------------------------------------------------------
# Plain-JAX glue (constant / adjacency / pooling construction)
# ----------------------------------------------------------------------------

def build_weight_mask(num_m, num_n_step, num_o_step, num_actual_relations):
    """Reproduces DRGCNConv.weight_mask construction (host-side, static)."""
    R = 2 * num_actual_relations
    num_n_tot = num_n_step * num_actual_relations
    num_o_tot = num_o_step * R
    B = num_m + num_n_tot + num_o_tot
    mask = np.zeros((R, B), dtype=np.float32)
    mask[:, :num_m] = 1.0
    for row_i in range(R):
        for col_i in range(num_actual_relations):
            if row_i == col_i or row_i == col_i + num_actual_relations:
                c = col_i * num_n_step
                mask[row_i, num_m + c: num_m + c + num_n_step] = 1.0
        start = num_m + num_n_tot + row_i * num_o_step
        mask[row_i, start:start + num_o_step] = 1.0
    return jnp.asarray(mask)


def compose_weights(weight_mask, comp, weight):
    """W_eff[r] = sum_b (mask*comp)[r,b] * weight[b]  ->  [R, Cin, Cout]."""
    B, Cin, Cout = weight.shape
    w_eff = (weight_mask * comp) @ weight.reshape(B, Cin * Cout)
    return w_eff.reshape(-1, Cin, Cout)


def build_adj(edge_index, edge_type, num_nodes, num_actual_relations):
    """Dense mean-normalized adjacency for forward + reversed relations.

    A[r, dst, src] = 1/deg_r(dst)  (deg = # incoming type-r edges at dst;
    duplicate edges counted, isolated nodes stay zero — matches PyG 'mean').
    """
    R = 2 * num_actual_relations
    src, dst = edge_index[0], edge_index[1]
    src2 = jnp.concatenate([src, dst])          # reversed edges appended
    dst2 = jnp.concatenate([dst, src])
    et2 = jnp.concatenate([edge_type, edge_type + num_actual_relations])
    A = jnp.zeros((R, num_nodes, num_nodes), jnp.float32)
    A = A.at[et2, dst2, src2].add(1.0)
    deg = A.sum(axis=2, keepdims=True)
    A = A / jnp.maximum(deg, 1.0)
    return A


def build_pool(batch, num_graphs):
    """Mean-readout pooling matrix P [G, N]: P @ X == scatter_mean(X, batch)."""
    onehot = (batch[None, :] == jnp.arange(num_graphs)[:, None]).astype(jnp.float32)
    return onehot / jnp.maximum(onehot.sum(axis=1, keepdims=True), 1.0)


@functools.partial(jax.jit, static_argnames=("num_actual_relations", "num_graphs"))
def barebone_drgcn_forward(X, edge_index, edge_type, batch, weight_mask,
                           layer_params, head_params, *,
                           num_actual_relations, num_graphs):
    """Full BareboneDRGCN forward (inference). Returns logits [G, 1]."""
    N = X.shape[0]
    R = 2 * num_actual_relations
    A = build_adj(edge_index, edge_type, N, num_actual_relations)     # [R, N, N]
    A_flat = A.reshape(R * N, N)                                       # stacked
    P = build_pool(batch, num_graphs)                                  # [G, N]
    fused_layer_params = [
        (compose_weights(weight_mask, comp, w), root, bias)
        for (w, comp, root, bias) in layer_params
    ]
    return fused_forward(A_flat, X, fused_layer_params, P, head_params, R=R, N=N)


# ----------------------------------------------------------------------------
# Pure-JAX reference (for a correctness sanity check in the driver)
# ----------------------------------------------------------------------------

def reference_forward(X, edge_index, edge_type, batch, weight_mask,
                      layer_params, head_params, *, num_actual_relations,
                      num_graphs):
    A = build_adj(edge_index, edge_type, X.shape[0], num_actual_relations)
    P = build_pool(batch, num_graphs)
    x = X
    for (w, comp, root, bias) in layer_params:
        w_eff = compose_weights(weight_mask, comp, w)
        h = jnp.einsum('rij,jc->ric', A, x)
        out = jnp.einsum('ric,rcd->id', h, w_eff) + x @ root + bias
        x = jax.nn.relu(out)
    z = P @ x
    for li, (w, b) in enumerate(head_params):
        z = z @ w + b
        if li < len(head_params) - 1:
            z = jax.nn.relu(z)
    return z


# ----------------------------------------------------------------------------
# Driver
# ----------------------------------------------------------------------------

if __name__ == "__main__":
    key = jax.random.PRNGKey(0)
    keys = iter(jax.random.split(key, 32))

    # Small shapes consistent with the module
    N = 16                 # nodes
    IN_CH = 162            # fixed by BareboneDRGCN (in_channels of initial layer)
    HIDDEN = 32            # hidden_channels
    NUM_LAYERS = 2
    R_ACT = 5              # num_relations (edge_index1..5)
    R = 2 * R_ACT          # doubled (forward + reverse)
    NUM_M, NUM_N, NUM_O = 2, 1, 1
    NUM_BASES = NUM_M + NUM_N * R_ACT + NUM_O * R
    G = 2                  # graphs in the batch
    E_PER_REL = 6

    # Inputs: edge_index1..5, node features X, batch assignment
    # (all 5 relation edge tensors are non-empty, matching the module's
    #  host-side filtering of empty edge_index tensors).
    edges, etypes = [], []
    for r in range(R_ACT):
        src = jax.random.randint(next(keys), (E_PER_REL,), 0, N)
        dst = jax.random.randint(next(keys), (E_PER_REL,), 0, N)
        edges.append(jnp.stack([src, dst]))
        etypes.append(jnp.full((E_PER_REL,), r, jnp.int32))
    edge_index = jnp.concatenate(edges, axis=1)
    edge_type = jnp.concatenate(etypes, axis=0)

    X = jax.random.normal(next(keys), (N, IN_CH), jnp.float32)
    batch = jnp.concatenate([jnp.zeros(N // 2, jnp.int32),
                             jnp.ones(N - N // 2, jnp.int32)])

    # Deterministic glorot-style parameter init
    def glorot(k, shape):
        fan = shape[-2] + shape[-1] if len(shape) >= 2 else sum(shape)
        return jax.random.normal(k, shape, jnp.float32) * (2.0 / fan) ** 0.5

    weight_mask = build_weight_mask(NUM_M, NUM_N, NUM_O, R_ACT)   # [R, NUM_BASES]

    layer_params = []
    cin = IN_CH
    for _ in range(NUM_LAYERS):
        w = glorot(next(keys), (NUM_BASES, cin, HIDDEN))
        comp = glorot(next(keys), (R, NUM_BASES))
        root = glorot(next(keys), (cin, HIDDEN))
        bias = jnp.zeros((1, HIDDEN), jnp.float32)
        layer_params.append((w, comp, root, bias))
        cin = HIDDEN

    head_params = [
        (glorot(next(keys), (HIDDEN, HIDDEN)), jnp.zeros((1, HIDDEN), jnp.float32)),
        (glorot(next(keys), (HIDDEN, HIDDEN)), jnp.zeros((1, HIDDEN), jnp.float32)),
        (glorot(next(keys), (HIDDEN, 1)),      jnp.zeros((1, 1), jnp.float32)),
    ]

    logits = barebone_drgcn_forward(
        X, edge_index, edge_type, batch, weight_mask, layer_params, head_params,
        num_actual_relations=R_ACT, num_graphs=G)
    jax.block_until_ready(logits)
    assert logits.shape == (G, 1)

    # Sanity check against a pure-JAX (XLA) reference of the same math.
    ref = reference_forward(
        X, edge_index, edge_type, batch, weight_mask, layer_params, head_params,
        num_actual_relations=R_ACT, num_graphs=G)
    jax.block_until_ready(ref)
    assert jnp.allclose(logits, ref, rtol=2e-2, atol=2e-2), (
        f"mismatch: {logits} vs {ref}")

    print("KERNEL_OK")
</pallas_src>

<mosaic_0001>
module attributes {stable_mosaic.version = 11 : i64} {
  func.func @kernel(%arg0: memref<160x16xf32, #tpu.memory_space<vmem>>, %arg1: memref<16x162xf32, #tpu.memory_space<vmem>>, %arg2: memref<10x162x32xf32, #tpu.memory_space<vmem>>, %arg3: memref<162x32xf32, #tpu.memory_space<vmem>>, %arg4: memref<1x32xf32, #tpu.memory_space<vmem>>, %arg5: memref<10x32x32xf32, #tpu.memory_space<vmem>>, %arg6: memref<32x32xf32, #tpu.memory_space<vmem>>, %arg7: memref<1x32xf32, #tpu.memory_space<vmem>>, %arg8: memref<2x16xf32, #tpu.memory_space<vmem>>, %arg9: memref<32x32xf32, #tpu.memory_space<vmem>>, %arg10: memref<1x32xf32, #tpu.memory_space<vmem>>, %arg11: memref<32x32xf32, #tpu.memory_space<vmem>>, %arg12: memref<1x32xf32, #tpu.memory_space<vmem>>, %arg13: memref<32x1xf32, #tpu.memory_space<vmem>>, %arg14: memref<1x1xf32, #tpu.memory_space<vmem>>, %arg15: memref<2x1xf32, #tpu.memory_space<vmem>>) attributes {dimension_semantics = [], scalar_prefetch = 0 : i64, scratch_operands = 0 : i64, tpu.core_type = #tpu.core_type<tc>} {
    %c0 = arith.constant 0 : index
    %c0_0 = arith.constant 0 : index
    %0 = vector.load %arg0[%c0, %c0_0] : memref<160x16xf32, #tpu.memory_space<vmem>>, vector<160x16xf32>
    %c0_1 = arith.constant 0 : index
    %c0_2 = arith.constant 0 : index
    %1 = vector.load %arg1[%c0_1, %c0_2] : memref<16x162xf32, #tpu.memory_space<vmem>>, vector<16x162xf32>
    %cst = arith.constant dense<0.000000e+00> : vector<160x162xf32>
    %2 = tpu.matmul %0, %1, %cst {dimension_numbers = #tpu.dot_dimension_numbers<[1], [0], [0], [1], [0, 0, 1, 1], [], []>} : vector<160x16xf32>, vector<16x162xf32>, vector<160x162xf32> -> vector<160x162xf32>
    %c0_3 = arith.constant 0 : index
    %c0_4 = arith.constant 0 : index
    %3 = vector.load %arg3[%c0_3, %c0_4] : memref<162x32xf32, #tpu.memory_space<vmem>>, vector<162x32xf32>
    %cst_5 = arith.constant dense<0.000000e+00> : vector<16x32xf32>
    %4 = tpu.matmul %1, %3, %cst_5 {dimension_numbers = #tpu.dot_dimension_numbers<[1], [0], [0], [1], [0, 0, 1, 1], [], []>} : vector<16x162xf32>, vector<162x32xf32>, vector<16x32xf32> -> vector<16x32xf32>
    %c0_6 = arith.constant 0 : index
    %c0_7 = arith.constant 0 : index
    %5 = vector.load %arg4[%c0_6, %c0_7] : memref<1x32xf32, #tpu.memory_space<vmem>>, vector<1x32xf32>
    %6 = vector.broadcast %5 : vector<1x32xf32> to vector<16x32xf32>
    %7 = arith.addf %4, %6 : vector<16x32xf32>
    %8 = vector.extract_strided_slice %2 {offsets = [0, 0], sizes = [16, 162], strides = [1, 1]} : vector<160x162xf32> to vector<16x162xf32>
    %c0_8 = arith.constant 0 : index
    %c0_9 = arith.constant 0 : index
    %c0_10 = arith.constant 0 : index
    %9 = vector.load %arg2[%c0_8, %c0_9, %c0_10] : memref<10x162x32xf32, #tpu.memory_space<vmem>>, vector<1x162x32xf32>
    %10 = vector.shape_cast %9 : vector<1x162x32xf32> to vector<162x32xf32>
    %cst_11 = arith.constant dense<0.000000e+00> : vector<16x32xf32>
    %11 = tpu.matmul %8, %10, %cst_11 {dimension_numbers = #tpu.dot_dimension_numbers<[1], [0], [0], [1], [0, 0, 1, 1], [], []>} : vector<16x162xf32>, vector<162x32xf32>, vector<16x32xf32> -> vector<16x32xf32>
    %12 = arith.addf %7, %11 : vector<16x32xf32>
    %13 = vector.extract_strided_slice %2 {offsets = [16, 0], sizes = [16, 162], strides = [1, 1]} : vector<160x162xf32> to vector<16x162xf32>
    %c1 = arith.constant 1 : index
    %c0_12 = arith.constant 0 : index
    %c0_13 = arith.constant 0 : index
    %14 = vector.load %arg2[%c1, %c0_12, %c0_13] : memref<10x162x32xf32, #tpu.memory_space<vmem>>, vector<1x162x32xf32>
    %15 = vector.shape_cast %14 : vector<1x162x32xf32> to vector<162x32xf32>
    %cst_14 = arith.constant dense<0.000000e+00> : vector<16x32xf32>
    %16 = tpu.matmul %13, %15, %cst_14 {dimension_numbers = #tpu.dot_dimension_numbers<[1], [0], [0], [1], [0, 0, 1, 1], [], []>} : vector<16x162xf32>, vector<162x32xf32>, vector<16x32xf32> -> vector<16x32xf32>
    %17 = arith.addf %12, %16 : vector<16x32xf32>
    %18 = vector.extract_strided_slice %2 {offsets = [32, 0], sizes = [16, 162], strides = [1, 1]} : vector<160x162xf32> to vector<16x162xf32>
    %c2 = arith.constant 2 : index
    %c0_15 = arith.constant 0 : index
    %c0_16 = arith.constant 0 : index
    %19 = vector.load %arg2[%c2, %c0_15, %c0_16] : memref<10x162x32xf32, #tpu.memory_space<vmem>>, vector<1x162x32xf32>
    %20 = vector.shape_cast %19 : vector<1x162x32xf32> to vector<162x32xf32>
    %cst_17 = arith.constant dense<0.000000e+00> : vector<16x32xf32>
    %21 = tpu.matmul %18, %20, %cst_17 {dimension_numbers = #tpu.dot_dimension_numbers<[1], [0], [0], [1], [0, 0, 1, 1], [], []>} : vector<16x162xf32>, vector<162x32xf32>, vector<16x32xf32> -> vector<16x32xf32>
    %22 = arith.addf %17, %21 : vector<16x32xf32>
    %23 = vector.extract_strided_slice %2 {offsets = [48, 0], sizes = [16, 162], strides = [1, 1]} : vector<160x162xf32> to vector<16x162xf32>
    %c3 = arith.constant 3 : index
    %c0_18 = arith.constant 0 : index
    %c0_19 = arith.constant 0 : index
    %24 = vector.load %arg2[%c3, %c0_18, %c0_19] : memref<10x162x32xf32, #tpu.memory_space<vmem>>, vector<1x162x32xf32>
    %25 = vector.shape_cast %24 : vector<1x162x32xf32> to vector<162x32xf32>
    %cst_20 = arith.constant dense<0.000000e+00> : vector<16x32xf32>
    %26 = tpu.matmul %23, %25, %cst_20 {dimension_numbers = #tpu.dot_dimension_numbers<[1], [0], [0], [1], [0, 0, 1, 1], [], []>} : vector<16x162xf32>, vector<162x32xf32>, vector<16x32xf32> -> vector<16x32xf32>
    %27 = arith.addf %22, %26 : vector<16x32xf32>
    %28 = vector.extract_strided_slice %2 {offsets = [64, 0], sizes = [16, 162], strides = [1, 1]} : vector<160x162xf32> to vector<16x162xf32>
    %c4 = arith.constant 4 : index
    %c0_21 = arith.constant 0 : index
    %c0_22 = arith.constant 0 : index
    %29 = vector.load %arg2[%c4, %c0_21, %c0_22] : memref<10x162x32xf32, #tpu.memory_space<vmem>>, vector<1x162x32xf32>
    %30 = vector.shape_cast %29 : vector<1x162x32xf32> to vector<162x32xf32>
    %cst_23 = arith.constant dense<0.000000e+00> : vector<16x32xf32>
    %31 = tpu.matmul %28, %30, %cst_23 {dimension_numbers = #tpu.dot_dimension_numbers<[1], [0], [0], [1], [0, 0, 1, 1], [], []>} : vector<16x162xf32>, vector<162x32xf32>, vector<16x32xf32> -> vector<16x32xf32>
    %32 = arith.addf %27, %31 : vector<16x32xf32>
    %33 = vector.extract_strided_slice %2 {offsets = [80, 0], sizes = [16, 162], strides = [1, 1]} : vector<160x162xf32> to vector<16x162xf32>
    %c5 = arith.constant 5 : index
    %c0_24 = arith.constant 0 : index
    %c0_25 = arith.constant 0 : index
    %34 = vector.load %arg2[%c5, %c0_24, %c0_25] : memref<10x162x32xf32, #tpu.memory_space<vmem>>, vector<1x162x32xf32>
    %35 = vector.shape_cast %34 : vector<1x162x32xf32> to vector<162x32xf32>
    %cst_26 = arith.constant dense<0.000000e+00> : vector<16x32xf32>
    %36 = tpu.matmul %33, %35, %cst_26 {dimension_numbers = #tpu.dot_dimension_numbers<[1], [0], [0], [1], [0, 0, 1, 1], [], []>} : vector<16x162xf32>, vector<162x32xf32>, vector<16x32xf32> -> vector<16x32xf32>
    %37 = arith.addf %32, %36 : vector<16x32xf32>
    %38 = vector.extract_strided_slice %2 {offsets = [96, 0], sizes = [16, 162], strides = [1, 1]} : vector<160x162xf32> to vector<16x162xf32>
    %c6 = arith.constant 6 : index
    %c0_27 = arith.constant 0 : index
    %c0_28 = arith.constant 0 : index
    %39 = vector.load %arg2[%c6, %c0_27, %c0_28] : memref<10x162x32xf32, #tpu.memory_space<vmem>>, vector<1x162x32xf32>
    %40 = vector.shape_cast %39 : vector<1x162x32xf32> to vector<162x32xf32>
    %cst_29 = arith.constant dense<0.000000e+00> : vector<16x32xf32>
    %41 = tpu.matmul %38, %40, %cst_29 {dimension_numbers = #tpu.dot_dimension_numbers<[1], [0], [0], [1], [0, 0, 1, 1], [], []>} : vector<16x162xf32>, vector<162x32xf32>, vector<16x32xf32> -> vector<16x32xf32>
    %42 = arith.addf %37, %41 : vector<16x32xf32>
    %43 = vector.extract_strided_slice %2 {offsets = [112, 0], sizes = [16, 162], strides = [1, 1]} : vector<160x162xf32> to vector<16x162xf32>
    %c7 = arith.constant 7 : index
    %c0_30 = arith.constant 0 : index
    %c0_31 = arith.constant 0 : index
    %44 = vector.load %arg2[%c7, %c0_30, %c0_31] : memref<10x162x32xf32, #tpu.memory_space<vmem>>, vector<1x162x32xf32>
    %45 = vector.shape_cast %44 : vector<1x162x32xf32> to vector<162x32xf32>
    %cst_32 = arith.constant dense<0.000000e+00> : vector<16x32xf32>
    %46 = tpu.matmul %43, %45, %cst_32 {dimension_numbers = #tpu.dot_dimension_numbers<[1], [0], [0], [1], [0, 0, 1, 1], [], []>} : vector<16x162xf32>, vector<162x32xf32>, vector<16x32xf32> -> vector<16x32xf32>
    %47 = arith.addf %42, %46 : vector<16x32xf32>
    %48 = vector.extract_strided_slice %2 {offsets = [128, 0], sizes = [16, 162], strides = [1, 1]} : vector<160x162xf32> to vector<16x162xf32>
    %c8 = arith.constant 8 : index
    %c0_33 = arith.constant 0 : index
    %c0_34 = arith.constant 0 : index
    %49 = vector.load %arg2[%c8, %c0_33, %c0_34] : memref<10x162x32xf32, #tpu.memory_space<vmem>>, vector<1x162x32xf32>
    %50 = vector.shape_cast %49 : vector<1x162x32xf32> to vector<162x32xf32>
    %cst_35 = arith.constant dense<0.000000e+00> : vector<16x32xf32>
    %51 = tpu.matmul %48, %50, %cst_35 {dimension_numbers = #tpu.dot_dimension_numbers<[1], [0], [0], [1], [0, 0, 1, 1], [], []>} : vector<16x162xf32>, vector<162x32xf32>, vector<16x32xf32> -> vector<16x32xf32>
    %52 = arith.addf %47, %51 : vector<16x32xf32>
    %53 = vector.extract_strided_slice %2 {offsets = [144, 0], sizes = [16, 162], strides = [1, 1]} : vector<160x162xf32> to vector<16x162xf32>
    %c9 = arith.constant 9 : index
    %c0_36 = arith.constant 0 : index
    %c0_37 = arith.constant 0 : index
    %54 = vector.load %arg2[%c9, %c0_36, %c0_37] : memref<10x162x32xf32, #tpu.memory_space<vmem>>, vector<1x162x32xf32>
    %55 = vector.shape_cast %54 : vector<1x162x32xf32> to vector<162x32xf32>
    %cst_38 = arith.constant dense<0.000000e+00> : vector<16x32xf32>
    %56 = tpu.matmul %53, %55, %cst_38 {dimension_numbers = #tpu.dot_dimension_numbers<[1], [0], [0], [1], [0, 0, 1, 1], [], []>} : vector<16x162xf32>, vector<162x32xf32>, vector<16x32xf32> -> vector<16x32xf32>
    %57 = arith.addf %52, %56 : vector<16x32xf32>
    %cst_39 = arith.constant 0.000000e+00 : f32
    %58 = vector.broadcast %cst_39 : f32 to vector<16x32xf32>
    %59 = arith.maximumf %57, %58 : vector<16x32xf32>
    %cst_40 = arith.constant dense<0.000000e+00> : vector<160x32xf32>
    %60 = tpu.matmul %0, %59, %cst_40 {dimension_numbers = #tpu.dot_dimension_numbers<[1], [0], [0], [1], [0, 0, 1, 1], [], []>} : vector<160x16xf32>, vector<16x32xf32>, vector<160x32xf32> -> vector<160x32xf32>
    %c0_41 = arith.constant 0 : index
    %c0_42 = arith.constant 0 : index
    %61 = vector.load %arg6[%c0_41, %c0_42] : memref<32x32xf32, #tpu.memory_space<vmem>>, vector<32x32xf32>
    %cst_43 = arith.constant dense<0.000000e+00> : vector<16x32xf32>
    %62 = tpu.matmul %59, %61, %cst_43 {dimension_numbers = #tpu.dot_dimension_numbers<[1], [0], [0], [1], [0, 0, 1, 1], [], []>} : vector<16x32xf32>, vector<32x32xf32>, vector<16x32xf32> -> vector<16x32xf32>
    %c0_44 = arith.constant 0 : index
    %c0_45 = arith.constant 0 : index
    %63 = vector.load %arg7[%c0_44, %c0_45] : memref<1x32xf32, #tpu.memory_space<vmem>>, vector<1x32xf32>
    %64 = vector.broadcast %63 : vector<1x32xf32> to vector<16x32xf32>
    %65 = arith.addf %62, %64 : vector<16x32xf32>
    %66 = vector.extract_strided_slice %60 {offsets = [0, 0], sizes = [16, 32], strides = [1, 1]} : vector<160x32xf32> to vector<16x32xf32>
    %c0_46 = arith.constant 0 : index
    %c0_47 = arith.constant 0 : index
    %c0_48 = arith.constant 0 : index
    %67 = vector.load %arg5[%c0_46, %c0_47, %c0_48] : memref<10x32x32xf32, #tpu.memory_space<vmem>>, vector<1x32x32xf32>
    %68 = vector.shape_cast %67 : vector<1x32x32xf32> to vector<32x32xf32>
    %cst_49 = arith.constant dense<0.000000e+00> : vector<16x32xf32>
    %69 = tpu.matmul %66, %68, %cst_49 {dimension_numbers = #tpu.dot_dimension_numbers<[1], [0], [0], [1], [0, 0, 1, 1], [], []>} : vector<16x32xf32>, vector<32x32xf32>, vector<16x32xf32> -> vector<16x32xf32>
    %70 = arith.addf %65, %69 : vector<16x32xf32>
    %71 = vector.extract_strided_slice %60 {offsets = [16, 0], sizes = [16, 32], strides = [1, 1]} : vector<160x32xf32> to vector<16x32xf32>
    %c1_50 = arith.constant 1 : index
    %c0_51 = arith.constant 0 : index
    %c0_52 = arith.constant 0 : index
    %72 = vector.load %arg5[%c1_50, %c0_51, %c0_52] : memref<10x32x32xf32, #tpu.memory_space<vmem>>, vector<1x32x32xf32>
    %73 = vector.shape_cast %72 : vector<1x32x32xf32> to vector<32x32xf32>
    %cst_53 = arith.constant dense<0.000000e+00> : vector<16x32xf32>
    %74 = tpu.matmul %71, %73, %cst_53 {dimension_numbers = #tpu.dot_dimension_numbers<[1], [0], [0], [1], [0, 0, 1, 1], [], []>} : vector<16x32xf32>, vector<32x32xf32>, vector<16x32xf32> -> vector<16x32xf32>
    %75 = arith.addf %70, %74 : vector<16x32xf32>
    %76 = vector.extract_strided_slice %60 {offsets = [32, 0], sizes = [16, 32], strides = [1, 1]} : vector<160x32xf32> to vector<16x32xf32>
    %c2_54 = arith.constant 2 : index
    %c0_55 = arith.constant 0 : index
    %c0_56 = arith.constant 0 : index
    %77 = vector.load %arg5[%c2_54, %c0_55, %c0_56] : memref<10x32x32xf32, #tpu.memory_space<vmem>>, vector<1x32x32xf32>
    %78 = vector.shape_cast %77 : vector<1x32x32xf32> to vector<32x32xf32>
    %cst_57 = arith.constant dense<0.000000e+00> : vector<16x32xf32>
    %79 = tpu.matmul %76, %78, %cst_57 {dimension_numbers = #tpu.dot_dimension_numbers<[1], [0], [0], [1], [0, 0, 1, 1], [], []>} : vector<16x32xf32>, vector<32x32xf32>, vector<16x32xf32> -> vector<16x32xf32>
    %80 = arith.addf %75, %79 : vector<16x32xf32>
    %81 = vector.extract_strided_slice %60 {offsets = [48, 0], sizes = [16, 32], strides = [1, 1]} : vector<160x32xf32> to vector<16x32xf32>
    %c3_58 = arith.constant 3 : index
    %c0_59 = arith.constant 0 : index
    %c0_60 = arith.constant 0 : index
    %82 = vector.load %arg5[%c3_58, %c0_59, %c0_60] : memref<10x32x32xf32, #tpu.memory_space<vmem>>, vector<1x32x32xf32>
    %83 = vector.shape_cast %82 : vector<1x32x32xf32> to vector<32x32xf32>
    %cst_61 = arith.constant dense<0.000000e+00> : vector<16x32xf32>
    %84 = tpu.matmul %81, %83, %cst_61 {dimension_numbers = #tpu.dot_dimension_numbers<[1], [0], [0], [1], [0, 0, 1, 1], [], []>} : vector<16x32xf32>, vector<32x32xf32>, vector<16x32xf32> -> vector<16x32xf32>
    %85 = arith.addf %80, %84 : vector<16x32xf32>
    %86 = vector.extract_strided_slice %60 {offsets = [64, 0], sizes = [16, 32], strides = [1, 1]} : vector<160x32xf32> to vector<16x32xf32>
    %c4_62 = arith.constant 4 : index
    %c0_63 = arith.constant 0 : index
    %c0_64 = arith.constant 0 : index
    %87 = vector.load %arg5[%c4_62, %c0_63, %c0_64] : memref<10x32x32xf32, #tpu.memory_space<vmem>>, vector<1x32x32xf32>
    %88 = vector.shape_cast %87 : vector<1x32x32xf32> to vector<32x32xf32>
    %cst_65 = arith.constant dense<0.000000e+00> : vector<16x32xf32>
    %89 = tpu.matmul %86, %88, %cst_65 {dimension_numbers = #tpu.dot_dimension_numbers<[1], [0], [0], [1], [0, 0, 1, 1], [], []>} : vector<16x32xf32>, vector<32x32xf32>, vector<16x32xf32> -> vector<16x32xf32>
    %90 = arith.addf %85, %89 : vector<16x32xf32>
    %91 = vector.extract_strided_slice %60 {offsets = [80, 0], sizes = [16, 32], strides = [1, 1]} : vector<160x32xf32> to vector<16x32xf32>
    %c5_66 = arith.constant 5 : index
    %c0_67 = arith.constant 0 : index
    %c0_68 = arith.constant 0 : index
    %92 = vector.load %arg5[%c5_66, %c0_67, %c0_68] : memref<10x32x32xf32, #tpu.memory_space<vmem>>, vector<1x32x32xf32>
    %93 = vector.shape_cast %92 : vector<1x32x32xf32> to vector<32x32xf32>
    %cst_69 = arith.constant dense<0.000000e+00> : vector<16x32xf32>
    %94 = tpu.matmul %91, %93, %cst_69 {dimension_numbers = #tpu.dot_dimension_numbers<[1], [0], [0], [1], [0, 0, 1, 1], [], []>} : vector<16x32xf32>, vector<32x32xf32>, vector<16x32xf32> -> vector<16x32xf32>
    %95 = arith.addf %90, %94 : vector<16x32xf32>
    %96 = vector.extract_strided_slice %60 {offsets = [96, 0], sizes = [16, 32], strides = [1, 1]} : vector<160x32xf32> to vector<16x32xf32>
    %c6_70 = arith.constant 6 : index
    %c0_71 = arith.constant 0 : index
    %c0_72 = arith.constant 0 : index
    %97 = vector.load %arg5[%c6_70, %c0_71, %c0_72] : memref<10x32x32xf32, #tpu.memory_space<vmem>>, vector<1x32x32xf32>
    %98 = vector.shape_cast %97 : vector<1x32x32xf32> to vector<32x32xf32>
    %cst_73 = arith.constant dense<0.000000e+00> : vector<16x32xf32>
    %99 = tpu.matmul %96, %98, %cst_73 {dimension_numbers = #tpu.dot_dimension_numbers<[1], [0], [0], [1], [0, 0, 1, 1], [], []>} : vector<16x32xf32>, vector<32x32xf32>, vector<16x32xf32> -> vector<16x32xf32>
    %100 = arith.addf %95, %99 : vector<16x32xf32>
    %101 = vector.extract_strided_slice %60 {offsets = [112, 0], sizes = [16, 32], strides = [1, 1]} : vector<160x32xf32> to vector<16x32xf32>
    %c7_74 = arith.constant 7 : index
    %c0_75 = arith.constant 0 : index
    %c0_76 = arith.constant 0 : index
    %102 = vector.load %arg5[%c7_74, %c0_75, %c0_76] : memref<10x32x32xf32, #tpu.memory_space<vmem>>, vector<1x32x32xf32>
    %103 = vector.shape_cast %102 : vector<1x32x32xf32> to vector<32x32xf32>
    %cst_77 = arith.constant dense<0.000000e+00> : vector<16x32xf32>
    %104 = tpu.matmul %101, %103, %cst_77 {dimension_numbers = #tpu.dot_dimension_numbers<[1], [0], [0], [1], [0, 0, 1, 1], [], []>} : vector<16x32xf32>, vector<32x32xf32>, vector<16x32xf32> -> vector<16x32xf32>
    %105 = arith.addf %100, %104 : vector<16x32xf32>
    %106 = vector.extract_strided_slice %60 {offsets = [128, 0], sizes = [16, 32], strides = [1, 1]} : vector<160x32xf32> to vector<16x32xf32>
    %c8_78 = arith.constant 8 : index
    %c0_79 = arith.constant 0 : index
    %c0_80 = arith.constant 0 : index
    %107 = vector.load %arg5[%c8_78, %c0_79, %c0_80] : memref<10x32x32xf32, #tpu.memory_space<vmem>>, vector<1x32x32xf32>
    %108 = vector.shape_cast %107 : vector<1x32x32xf32> to vector<32x32xf32>
    %cst_81 = arith.constant dense<0.000000e+00> : vector<16x32xf32>
    %109 = tpu.matmul %106, %108, %cst_81 {dimension_numbers = #tpu.dot_dimension_numbers<[1], [0], [0], [1], [0, 0, 1, 1], [], []>} : vector<16x32xf32>, vector<32x32xf32>, vector<16x32xf32> -> vector<16x32xf32>
    %110 = arith.addf %105, %109 : vector<16x32xf32>
    %111 = vector.extract_strided_slice %60 {offsets = [144, 0], sizes = [16, 32], strides = [1, 1]} : vector<160x32xf32> to vector<16x32xf32>
    %c9_82 = arith.constant 9 : index
    %c0_83 = arith.constant 0 : index
    %c0_84 = arith.constant 0 : index
    %112 = vector.load %arg5[%c9_82, %c0_83, %c0_84] : memref<10x32x32xf32, #tpu.memory_space<vmem>>, vector<1x32x32xf32>
    %113 = vector.shape_cast %112 : vector<1x32x32xf32> to vector<32x32xf32>
    %cst_85 = arith.constant dense<0.000000e+00> : vector<16x32xf32>
    %114 = tpu.matmul %111, %113, %cst_85 {dimension_numbers = #tpu.dot_dimension_numbers<[1], [0], [0], [1], [0, 0, 1, 1], [], []>} : vector<16x32xf32>, vector<32x32xf32>, vector<16x32xf32> -> vector<16x32xf32>
    %115 = arith.addf %110, %114 : vector<16x32xf32>
    %cst_86 = arith.constant 0.000000e+00 : f32
    %116 = vector.broadcast %cst_86 : f32 to vector<16x32xf32>
    %117 = arith.maximumf %115, %116 : vector<16x32xf32>
    %c0_87 = arith.constant 0 : index
    %c0_88 = arith.constant 0 : index
    %118 = vector.load %arg8[%c0_87, %c0_88] : memref<2x16xf32, #tpu.memory_space<vmem>>, vector<2x16xf32>
    %cst_89 = arith.constant dense<0.000000e+00> : vector<2x32xf32>
    %119 = tpu.matmul %118, %117, %cst_89 {dimension_numbers = #tpu.dot_dimension_numbers<[1], [0], [0], [1], [0, 0, 1, 1], [], []>} : vector<2x16xf32>, vector<16x32xf32>, vector<2x32xf32> -> vector<2x32xf32>
    %c0_90 = arith.constant 0 : index
    %c0_91 = arith.constant 0 : index
    %120 = vector.load %arg9[%c0_90, %c0_91] : memref<32x32xf32, #tpu.memory_space<vmem>>, vector<32x32xf32>
    %cst_92 = arith.constant dense<0.000000e+00> : vector<2x32xf32>
    %121 = tpu.matmul %119, %120, %cst_92 {dimension_numbers = #tpu.dot_dimension_numbers<[1], [0], [0], [1], [0, 0, 1, 1], [], []>} : vector<2x32xf32>, vector<32x32xf32>, vector<2x32xf32> -> vector<2x32xf32>
    %c0_93 = arith.constant 0 : index
    %c0_94 = arith.constant 0 : index
    %122 = vector.load %arg10[%c0_93, %c0_94] : memref<1x32xf32, #tpu.memory_space<vmem>>, vector<1x32xf32>
    %123 = vector.broadcast %122 : vector<1x32xf32> to vector<2x32xf32>
    %124 = arith.addf %121, %123 : vector<2x32xf32>
    %cst_95 = arith.constant 0.000000e+00 : f32
    %125 = vector.broadcast %cst_95 : f32 to vector<2x32xf32>
    %126 = arith.maximumf %124, %125 : vector<2x32xf32>
    %c0_96 = arith.constant 0 : index
    %c0_97 = arith.constant 0 : index
    %127 = vector.load %arg11[%c0_96, %c0_97] : memref<32x32xf32, #tpu.memory_space<vmem>>, vector<32x32xf32>
    %cst_98 = arith.constant dense<0.000000e+00> : vector<2x32xf32>
    %128 = tpu.matmul %126, %127, %cst_98 {dimension_numbers = #tpu.dot_dimension_numbers<[1], [0], [0], [1], [0, 0, 1, 1], [], []>} : vector<2x32xf32>, vector<32x32xf32>, vector<2x32xf32> -> vector<2x32xf32>
    %c0_99 = arith.constant 0 : index
    %c0_100 = arith.constant 0 : index
    %129 = vector.load %arg12[%c0_99, %c0_100] : memref<1x32xf32, #tpu.memory_space<vmem>>, vector<1x32xf32>
    %130 = vector.broadcast %129 : vector<1x32xf32> to vector<2x32xf32>
    %131 = arith.addf %128, %130 : vector<2x32xf32>
    %cst_101 = arith.constant 0.000000e+00 : f32
    %132 = vector.broadcast %cst_101 : f32 to vector<2x32xf32>
    %133 = arith.maximumf %131, %132 : vector<2x32xf32>
    %c0_102 = arith.constant 0 : index
    %c0_103 = arith.constant 0 : index
    %134 = vector.load %arg13[%c0_102, %c0_103] : memref<32x1xf32, #tpu.memory_space<vmem>>, vector<32x1xf32>
    %cst_104 = arith.constant dense<0.000000e+00> : vector<2x1xf32>
    %135 = tpu.matmul %133, %134, %cst_104 {dimension_numbers = #tpu.dot_dimension_numbers<[1], [0], [0], [1], [0, 0, 1, 1], [], []>} : vector<2x32xf32>, vector<32x1xf32>, vector<2x1xf32> -> vector<2x1xf32>
    %c0_105 = arith.constant 0 : index
    %c0_106 = arith.constant 0 : index
    %136 = vector.load %arg14[%c0_105, %c0_106] : memref<1x1xf32, #tpu.memory_space<vmem>>, vector<1x1xf32>
    %137 = vector.broadcast %136 : vector<1x1xf32> to vector<2x1xf32>
    %138 = arith.addf %135, %137 : vector<2x1xf32>
    %c0_107 = arith.constant 0 : index
    %c0_108 = arith.constant 0 : index
    %139 = vector.load %arg15[%c0_107, %c0_108] : memref<2x1xf32, #tpu.memory_space<vmem>>, vector<2x1xf32>
    tpu.vector_store %arg15[%c0_107, %c0_108], %138 {strides = array<i32>} : memref<2x1xf32, #tpu.memory_space<vmem>>, vector<2x1xf32>,
    return
  }
}

</mosaic_0001>

<bundles_post_ra>
// kernel: barebone_drgcn_forward.1
= control target key start
LH: loop header
LB: loop body
LE: loop exit
PB: predicated region body
PF: predicated region fallthrough
CT: control target
= control target key end

     0   :  { %vm76_vm0 = vcmask 130048   ;;  %vm323_vm1 = vcmask 1041408   ;;  %vm316_vm2 = vcmask 277504   ;;  %vm1249_vm3 = vcmask 261120   ;;  %s3372_s1 = inlined_call_operand.vmem [shape: f32[16,162], index: 1, kind: input, shape index: {}]   ;;  %s3373_s0 = inlined_call_operand.vmem [shape: f32[160,16], index: 0, kind: input, shape index: {}]   ;;  %s3374_s3 = inlined_call_operand.vmem [shape: f32[162,32], index: 3, kind: input, shape index: {}]   ;;  %s3375_s2 = inlined_call_operand.vmem [shape: f32[10,162,32], index: 2, kind: input, shape index: {}]   ;;  %s3376_s4 = inlined_call_operand.vmem [shape: f32[1,32], index: 4, kind: input, shape index: {}]   ;;  %s3377_s6 = inlined_call_operand.vmem [shape: f32[32,32], index: 6, kind: input, shape index: {}]   ;;  %s3378_s7 = inlined_call_operand.vmem [shape: f32[1,32], index: 7, kind: input, shape index: {}]   ;;  %s3379_s5 = inlined_call_operand.vmem [shape: f32[10,32,32], index: 5, kind: input, shape index: {}]   ;;  %s3380_s9 = inlined_call_operand.vmem [shape: f32[32,32], index: 9, kind: input, shape index: {}]   ;;  %s3381_s8 = inlined_call_operand.vmem [shape: f32[2,16], index: 8, kind: input, shape index: {}]   ;;  %s3382_s10 = inlined_call_operand.vmem [shape: f32[1,32], index: 10, kind: input, shape index: {}]   ;;  %s3383_s11 = inlined_call_operand.vmem [shape: f32[32,32], index: 11, kind: input, shape index: {}]   ;;  %s3384_s12 = inlined_call_operand.vmem [shape: f32[1,32], index: 12, kind: input, shape index: {}]   ;;  %s3385_s13 = inlined_call_operand.vmem [shape: f32[32,1], index: 13, kind: input, shape index: {}]   ;;  %s3386_s14 = inlined_call_operand.<no memory space> [shape: f32[1,1], index: 14, kind: input, shape index: {}]   ;;  %s3387_s15 = inlined_call_operand.vmem [shape: f32[2,1], index: 15, kind: output, shape index: {}]  }
   0x1   :  { %v2218_v0 = vld [vmem:[%s3372_s1 + $0x10] sm:$0xff]  ;;  %v2223_v1 = vld [vmem:[%s3372_s1 + $0x18] sm:$0xff]  ;;  %v2228_v2 = vld [vmem:[%s3372_s1] sm:$0xff]  ;;  %vm1759_vm4 = vcmask 1024  }
   0x2   :  { %151 = vmatpush.msra.mxu0 %v2218_v0  ;;  %228 = vmatpush.msra.mxu1 %v2223_v1  ;;  %v2235_v3 = vld [vmem:[%s3372_s1 + $0x8] sm:$0xff]  ;;  %v52_v4 = vld [vmem:[%s3373_s0] sm:$0xff]  ;;  %v54_v6 = vld [vmem:[%s3373_s0 + $0x10] sm:$0xff] }
   0x3   :  { %v53_v5 = vld [vmem:[%s3373_s0 + $0x8] sm:$0xff]  ;;  %v55_v7 = vld [vmem:[%s3373_s0 + $0x18] sm:$0xff]  ;;  %v56_v8 = vld [vmem:[%s3373_s0 + $0x20] sm:$0xff] }
   0x4   :  { %152 = vmatpush.msra.mxu0 %v2228_v2  ;;  %229 = vmatpush.msra.mxu1 %v2235_v3  ;;  %v57_v9 = vld [vmem:[%s3373_s0 + $0x28] sm:$0xff]  ;;  %v306_v10 = vld [vmem:[%s3374_s3 + $0x78] sm:$0xff]  ;;  %v305_v11 = vld [vmem:[%s3374_s3 + $0x70] sm:$0xff] }
   0x5   :  { %1765 = vmatmul.msk.f32.vlgmr.msra.gmra.mxu0 %vm76_vm0, %v52_v4  ;;  %1785 = vmatmul.msk.f32.vlgmr.msra.gmra.mxu1 %vm76_vm0, %v52_v4  ;;  %v58_v12 = vld [vmem:[%s3373_s0 + $0x30] sm:$0xff]  ;;  %v304_v13 = vld [vmem:[%s3374_s3 + $0x68] sm:$0xff]  ;;  %v303_v14 = vld [vmem:[%s3374_s3 + $0x60] sm:$0xff] }
   0x6   :  { %327 = vmatpush.msra.mxu2 %v306_v10  ;;  %v302_v15 = vld [vmem:[%s3374_s3 + $0x58] sm:$0xff]  ;;  %v301_v16 = vld [vmem:[%s3374_s3 + $0x50] sm:$0xff]  ;;  %v300_v18 = vld [vmem:[%s3374_s3 + $0x48] sm:$0xff] }
   0x7   :  { %v59_v17 = vld [vmem:[%s3373_s0 + $0x38] sm:$0xff]  ;;  %v299_v19 = vld [vmem:[%s3374_s3 + $0x40] sm:$0xff]  ;;  %v297_v23 = vld [vmem:[%s3374_s3 + $0x30] sm:$0xff] }
   0x8   :  { %328 = vmatpush.msra.mxu2 %v305_v11  ;;  %v311_v20 = vld [vmem:[%s3374_s3 + $0xa0] sm:$0x3]  ;;  %v388_v21 = vld [vmem:[%s3375_s2 + $0x78] sm:$0xff]  ;;  %v296_v26 = vld [vmem:[%s3374_s3 + $0x28] sm:$0xff] }
   0x9   :  { %v298_v22 = vld [vmem:[%s3374_s3 + $0x38] sm:$0xff]  ;;  %1805 = vmatpush.msk.msra.mxu3 %vm323_vm1, %v311_v20  ;;  %403 = vmatpush.msrb.mxu0 %v388_v21  ;;  %v60_v24 = vld [vmem:[%s3373_s0 + $0x40] sm:$0xff]  ;;  %v1946_v27 = vld [vmem:[%s3375_s2 + $0x468] sm:$0xff] }
   0xa   :  { %329 = vmatpush.msra.mxu2 %v304_v13  ;;  %v310_v25 = vld [vmem:[%s3374_s3 + $0x98] sm:$0xff]  ;;  %v309_v28 = vld [vmem:[%s3374_s3 + $0x90] sm:$0xff]  ;;  %v295_v29 = vld [vmem:[%s3374_s3 + $0x20] sm:$0xff]  ;;  %877 = vmatpush.msrb.mxu1 %v1946_v27 }
   0xb   :  { %362 = vmatpush.msra.mxu3 %v310_v25  ;;  %v308_v30 = vld [vmem:[%s3374_s3 + $0x88] sm:$0xff]  ;;  %v294_v31 = vld [vmem:[%s3374_s3 + $0x18] sm:$0xff]  ;;  %v307_v32 = vld [vmem:[%s3374_s3 + $0x80] sm:$0xff] }
   0xc   :  { %330 = vmatpush.msra.mxu2 %v303_v14  ;;  %v293_v33 = vld [vmem:[%s3374_s3 + $0x10] sm:$0xff]  ;;  %v61_v34 = vld [vmem:[%s3373_s0 + $0x48] sm:$0xff]  ;;  %v1826_v35 = vld [vmem:[%s3375_s2 + $0x120] sm:$0xff] }
   0xd   :  { %1766 = vmatmul.msk.f32.gmra.mxu0 %vm76_vm0, %v53_v5  ;;  %1786 = vmatmul.msk.f32.gmra.mxu1 %vm76_vm0, %v53_v5  ;;  %v292_v36 = vld [vmem:[%s3374_s3 + $0x8] sm:$0xff]  ;;  %v387_v37 = vld [vmem:[%s3375_s2 + $0x70] sm:$0xff]  ;;  %v1825_v38 = vld [vmem:[%s3375_s2 + $0x118] sm:$0xff] }
   0xe   :  { %331 = vmatpush.msra.mxu2 %v302_v15  ;;  %363 = vmatpush.msra.mxu3 %v309_v28  ;;  %v291_v39 = vld [vmem:[%s3374_s3] sm:$0xff]  ;;  %v1824_v41 = vld [vmem:[%s3375_s2 + $0x110] sm:$0xff]  ;;  %v392_v43 = vld [vmem:[%s3375_s2 + $0x98] sm:$0xff] }
   0xf   :  { %v1945_v40 = vld [vmem:[%s3375_s2 + $0x460] sm:$0xff]  ;;  %404 = vmatpush.msrb.mxu0 %v387_v37  ;;  %v1823_v44 = vld [vmem:[%s3375_s2 + $0x108] sm:$0xff]  ;;  %v62_v45 = vld [vmem:[%s3373_s0 + $0x50] sm:$0xff] }
  0x10   :  { %332 = vmatpush.msra.mxu2 %v301_v16  ;;  %364 = vmatpush.msra.mxu3 %v308_v30  ;;  %v393_v42 = vld [vmem:[%s3375_s2 + $0xa0] sm:$0x3]  ;;  %v391_v47 = vld [vmem:[%s3375_s2 + $0x90] sm:$0xff]  ;;  %v1821_v48 = vld [vmem:[%s3375_s2 + $0xf8] sm:$0xff] }
  0x11   :  { %878 = vmatpush.msrb.mxu1 %v1945_v40  ;;  %v1822_v46 = vld [vmem:[%s3375_s2 + $0x100] sm:$0xff]  ;;  %v390_v49 = vld [vmem:[%s3375_s2 + $0x88] sm:$0xff]  ;;  %v1820_v51 = vld [vmem:[%s3375_s2 + $0xf0] sm:$0xff] }
  0x12   :  { %333 = vmatpush.msra.mxu2 %v300_v18  ;;  %365 = vmatpush.msra.mxu3 %v307_v32  ;;  %v386_v50 = vld [vmem:[%s3375_s2 + $0x68] sm:$0xff]  ;;  %v389_v52 = vld [vmem:[%s3375_s2 + $0x80] sm:$0xff]  ;;  %v1944_v53 = vld [vmem:[%s3375_s2 + $0x458] sm:$0xff] }
  0x13   :  { %405 = vmatpush.msrb.mxu0 %v386_v50  ;;  %v1831_v54 = vld [vmem:[%s3375_s2 + $0x148] sm:$0x3]  ;;  %879 = vmatpush.msrb.mxu1 %v1944_v53  ;;  %v63_v56 = vld [vmem:[%s3373_s0 + $0x58] sm:$0xff]  ;;  %v1818_v57 = vld [vmem:[%s3375_s2 + $0xe0] sm:$0xff] }
  0x14   :  { %334 = vmatpush.msra.mxu2 %v299_v19  ;;  %482 = vmatpush.msrb.mxu3 %v1826_v35  ;;  %v1819_v55 = vld [vmem:[%s3375_s2 + $0xe8] sm:$0xff]  ;;  %v1830_v58 = vld [vmem:[%s3375_s2 + $0x140] sm:$0xff]  ;;  %v1817_v59 = vld [vmem:[%s3375_s2 + $0xd8] sm:$0xff] }
  0x15   :  { %1767 = vmatmul.msk.f32.gmra.mxu0 %vm76_vm0, %v54_v6  ;;  %1787 = vmatmul.msk.f32.gmra.mxu1 %vm76_vm0, %v54_v6  ;;  %v1829_v60 = vld [vmem:[%s3375_s2 + $0x138] sm:$0xff]  ;;  %v1816_v61 = vld [vmem:[%s3375_s2 + $0xd0] sm:$0xff]  ;;  %v1815_v63 = vld [vmem:[%s3375_s2 + $0xc8] sm:$0xff] }
  0x16   :  { %335 = vmatpush.msra.mxu2 %v298_v22  ;;  %483 = vmatpush.msrb.mxu3 %v1825_v38  ;;  %v1828_v62 = vld [vmem:[%s3375_s2 + $0x130] sm:$0xff]  ;;  %v385_v4 = vld [vmem:[%s3375_s2 + $0x60] sm:$0xff]  ;;  %v384_v11 = vld [vmem:[%s3375_s2 + $0x58] sm:$0xff] }
  0x17   :  { %406 = vmatpush.msrb.mxu0 %v385_v4  ;;  %1806 = vmatmul.msk.f32.vlgmr.msra.gmra.mxu3 %vm316_vm2, %v2235_v3  ;;  %v1814_v5 = vld [vmem:[%s3375_s2 + $0xc0] sm:$0xff]  ;;  %v1943_v6 = vld [vmem:[%s3375_s2 + $0x450] sm:$0xff]  ;;  %v1813_v3 = vld [vmem:[%s3375_s2 + $0xb8] sm:$0xff] }
  0x18   :  { %336 = vmatpush.msra.mxu2 %v297_v23  ;;  %484 = vmatpush.msrb.mxu3 %v1824_v41  ;;  %v1855_v10 = vld [vmem:[%s3375_s2 + $0x1f0] sm:$0x3]  ;;  %v1853_v13 = vld [vmem:[%s3375_s2 + $0x1e0] sm:$0xff]  ;;  %v1852_v15 = vld [vmem:[%s3375_s2 + $0x1d8] sm:$0xff] }
  0x19   :  { %880 = vmatpush.msrb.mxu1 %v1943_v6  ;;  %407 = vmatpush.msrb.mxu0 %v384_v11  ;;  %v383_v14 = vld [vmem:[%s3375_s2 + $0x50] sm:$0xff]  ;;  %v381_v19 = vld [vmem:[%s3375_s2 + $0x40] sm:$0xff]  ;;  %v380_v20 = vld [vmem:[%s3375_s2 + $0x38] sm:$0xff] }
  0x1a   :  { %337 = vmatpush.msra.mxu2 %v296_v26  ;;  %485 = vmatpush.msrb.mxu3 %v1823_v44  ;;  %v66_v16 = vld [vmem:[%s3373_s0 + $0x70] sm:$0xff]  ;;  %v1941_v22 = vld [vmem:[%s3375_s2 + $0x440] sm:$0xff]  ;;  %v67_v23 = vld [vmem:[%s3373_s0 + $0x78] sm:$0xff] }
  0x1b   :  { %408 = vmatpush.msrb.mxu0 %v383_v14  ;;  %v1851_v18 = vld [vmem:[%s3375_s2 + $0x1d0] sm:$0xff]  ;;  %v377_v25 = vld [vmem:[%s3375_s2 + $0x20] sm:$0xff]  ;;  %v376_v26 = vld [vmem:[%s3375_s2 + $0x18] sm:$0xff] }
  0x1c   :  { %338 = vmatpush.msra.mxu2 %v295_v29  ;;  %486 = vmatpush.msrb.mxu3 %v1822_v46  ;;  %v379_v21 = vld [vmem:[%s3375_s2 + $0x30] sm:$0xff]  ;;  %v1850_v28 = vld [vmem:[%s3375_s2 + $0x1c8] sm:$0xff]  ;;  %v373_v35 = vld [vmem:[%s3375_s2] sm:$0xff] }
  0x1d   :  { %1768 = vmatmul.msk.f32.gmra.mxu0 %vm76_vm0, %v55_v7  ;;  %1788 = vmatmul.msk.f32.gmra.mxu1 %vm76_vm0, %v55_v7  ;;  %v1812_v7 = vld [vmem:[%s3375_s2 + $0xb0] sm:$0xff]  ;;  %v374_v32 = vld [vmem:[%s3375_s2 + $0x8] sm:$0xff]  ;;  %v1840_v53 = vld [vmem:[%s3375_s2 + $0x178] sm:$0xff] }
  0x1e   :  { %339 = vmatpush.msra.mxu2 %v294_v31  ;;  %487 = vmatpush.msrb.mxu3 %v1821_v48  ;;  %v375_v27 = vld [vmem:[%s3375_s2 + $0x10] sm:$0xff]  ;;  %v68_v31 = vld [vmem:[%s3373_s0 + $0x80] sm:$0xff]  ;;  %v1846_v38 = vld [vmem:[%s3375_s2 + $0x1a8] sm:$0xff] }
  0x1f   :  { %1807 = vmatmul.msk.f32.gmra.mxu3 %vm316_vm2, %v2223_v1  ;;  %v1942_v1 = vld [vmem:[%s3375_s2 + $0x448] sm:$0xff]  ;;  %v1847_v37 = vld [vmem:[%s3375_s2 + $0x1b0] sm:$0xff]  ;;  %v1836_v6 = vld [vmem:[%s3375_s2 + $0x158] sm:$0xff] }
  0x20   :  { %340 = vmatpush.msra.mxu2 %v293_v33  ;;  %488 = vmatpush.msrb.mxu3 %v1820_v51  ;;  %v1849_v33 = vld [vmem:[%s3375_s2 + $0x1c0] sm:$0xff]  ;;  %v69_v41 = vld [vmem:[%s3373_s0 + $0x88] sm:$0xff]  ;;  %v1939_v44 = vld [vmem:[%s3375_s2 + $0x430] sm:$0xff] }
  0x21   :  { %881 = vmatpush.msrb.mxu1 %v1942_v1  ;;  %v1842_v46 = vld [vmem:[%s3375_s2 + $0x188] sm:$0xff]  ;;  %v70_v50 = vld [vmem:[%s3373_s0 + $0x90] sm:$0xff]  ;;  %v1841_v51 = vld [vmem:[%s3375_s2 + $0x180] sm:$0xff] }
  0x22   :  { %341 = vmatpush.msra.mxu2 %v292_v36  ;;  %489 = vmatpush.msrb.mxu3 %v1819_v55  ;;  %v1848_v36 = vld [vmem:[%s3375_s2 + $0x1b8] sm:$0xff]  ;;  %v1922_v55 = vld [vmem:[%s3375_s2 + $0x3c0] sm:$0xff]  ;;  %v1869_v4 = vld [vmem:[%s3375_s2 + $0x248] sm:$0xff] }
  0x23   :  { %882 = vmatpush.msrb.mxu1 %v1941_v22  ;;  %v1866_v11 = vld [vmem:[%s3375_s2 + $0x230] sm:$0xff]  ;;  %v1865_v14 = vld [vmem:[%s3375_s2 + $0x228] sm:$0xff] }
  0x24   :  { %342 = vmatpush.msra.mxu2 %v291_v39  ;;  %490 = vmatpush.msrb.mxu3 %v1818_v57  ;;  %v1871_v57 = vld [vmem:[%s3375_s2 + $0x258] sm:$0xff]  ;;  %v1916_v22 = vld [vmem:[%s3375_s2 + $0x390] sm:$0xff] }
  0x25   :  { %1769 = vmatmul.msk.f32.gmra.mxu0 %vm76_vm0, %v56_v8  ;;  %1789 = vmatmul.msk.f32.gmra.mxu1 %vm76_vm0, %v56_v8  ;;  %v65_v8 = vld [vmem:[%s3373_s0 + $0x68] sm:$0xff] }
  0x26   :  { %1808 = vmatpush.msk.msrb.mxu2 %vm323_vm1, %v393_v42  ;;  %491 = vmatpush.msrb.mxu3 %v1817_v59  ;;  %v1845_v42 = vld [vmem:[%s3375_s2 + $0x1a0] sm:$0xff]  ;;  %v1938_v59 = vld [vmem:[%s3375_s2 + $0x428] sm:$0xff] }
  0x27   :  { %343 = vmatmul.f32.vlgmr.msra.gmra.mxu2 %v2228_v2  ;;  %v64_v2 = vld [vmem:[%s3373_s0 + $0x60] sm:$0xff] }
  0x28   :  { %438 = vmatpush.msrb.mxu2 %v392_v43  ;;  %492 = vmatpush.msrb.mxu3 %v1816_v61  ;;  %v1844_v43 = vld [vmem:[%s3375_s2 + $0x198] sm:$0xff]  ;;  %v1870_v61 = vld [vmem:[%s3375_s2 + $0x250] sm:$0xff] }
  0x2a   :  { %439 = vmatpush.msrb.mxu2 %v391_v47  ;;  %493 = vmatpush.msrb.mxu3 %v1815_v63  ;;  %v1874_v47 = vld [vmem:[%s3375_s2 + $0x270] sm:$0xff] }
  0x2c   :  { %440 = vmatpush.msrb.mxu2 %v390_v49  ;;  %494 = vmatpush.msrb.mxu3 %v1814_v5  ;;  %v1920_v5 = vld [vmem:[%s3375_s2 + $0x3b0] sm:$0xff] }
  0x2d   :  { %1770 = vmatmul.msk.f32.gmra.mxu0 %vm76_vm0, %v57_v9  ;;  %1790 = vmatmul.msk.f32.gmra.mxu1 %vm76_vm0, %v57_v9  ;;  %v1811_v9 = vld [vmem:[%s3375_s2 + $0xa8] sm:$0xff] }
  0x2e   :  { %441 = vmatpush.msrb.mxu2 %v389_v52  ;;  %495 = vmatpush.msrb.mxu3 %v1813_v3  ;;  %v1873_v52 = vld [vmem:[%s3375_s2 + $0x268] sm:$0xff]  ;;  %v1868_v3 = vld [vmem:[%s3375_s2 + $0x240] sm:$0xff] }
  0x2f   :  { %346 = vmatmul.f32.gmra.mxu2 %v2218_v0  ;;  %v1827_v0 = vld [vmem:[%s3375_s2 + $0x128] sm:$0xff] }
  0x30   :  { %1832 = vmatpush.msk.msra.mxu2 %vm323_vm1, %v1831_v54  ;;  %496 = vmatpush.msrb.mxu3 %v1812_v7  ;;  %v1872_v54 = vld [vmem:[%s3375_s2 + $0x260] sm:$0xff]  ;;  %v1919_v7 = vld [vmem:[%s3375_s2 + $0x3a8] sm:$0xff] }
  0x32   :  { %517 = vmatpush.msra.mxu2 %v1830_v58  ;;  %497 = vmatpush.msrb.mxu3 %v1811_v9  ;;  %v1921_v58 = vld [vmem:[%s3375_s2 + $0x3b8] sm:$0xff] }
  0x33   :  { %v1867_v9 = vld [vmem:[%s3375_s2 + $0x238] sm:$0xff] }
  0x34   :  { %518 = vmatpush.msra.mxu2 %v1829_v60  ;;  %1856 = vmatpush.msk.msra.mxu3 %vm323_vm1, %v1855_v10  ;;  %v1838_v60 = vld [vmem:[%s3375_s2 + $0x168] sm:$0xff]  ;;  %v1879_v10 = vld [vmem:[%s3375_s2 + $0x298] sm:$0x3] }
  0x35   :  { %1771 = vmatmul.msk.f32.gmra.mxu0 %vm76_vm0, %v58_v12  ;;  %1791 = vmatmul.msk.f32.gmra.mxu1 %vm76_vm0, %v58_v12  ;;  %v1854_v12 = vld [vmem:[%s3375_s2 + $0x1e8] sm:$0xff] }
  0x36   :  { %519 = vmatpush.msra.mxu2 %v1828_v62  ;;  %596 = vmatpush.msra.mxu3 %v1854_v12 }
  0x38   :  { %520 = vmatpush.msra.mxu2 %v1827_v0  ;;  %597 = vmatpush.msra.mxu3 %v1853_v13  ;;  %v2645_v0 = vld [vmem:[%s3373_s0 + $0x98] sm:$0xff]  ;;  %v1878_v13 = vld [vmem:[%s3375_s2 + $0x290] sm:$0xff] }
  0x3a   :  { %598 = vmatpush.msra.mxu3 %v1852_v15  ;;  %v1918_v15 = vld [vmem:[%s3375_s2 + $0x3a0] sm:$0xff] }
  0x3c   :  { %599 = vmatpush.msra.mxu3 %v1851_v18  ;;  %v1864_v18 = vld [vmem:[%s3375_s2 + $0x220] sm:$0xff] }
  0x3d   :  { %1772 = vmatmul.msk.f32.gmra.mxu0 %vm76_vm0, %v59_v17  ;;  %1792 = vmatmul.msk.f32.gmra.mxu1 %vm76_vm0, %v59_v17  ;;  %v382_v17 = vld [vmem:[%s3375_s2 + $0x48] sm:$0xff] }
  0x3e   :  { %409 = vmatpush.msrb.mxu0 %v382_v17  ;;  %v1937_v17 = vld [vmem:[%s3375_s2 + $0x420] sm:$0xff] }
  0x40   :  { %410 = vmatpush.msrb.mxu0 %v381_v19  ;;  %v1917_v19 = vld [vmem:[%s3375_s2 + $0x398] sm:$0xff] }
  0x42   :  { %411 = vmatpush.msrb.mxu0 %v380_v20  ;;  %v1876_v20 = vld [vmem:[%s3375_s2 + $0x280] sm:$0xff] }
  0x44   :  { %412 = vmatpush.msrb.mxu0 %v379_v21  ;;  %v1863_v21 = vld [vmem:[%s3375_s2 + $0x218] sm:$0xff] }
  0x45   :  { %1773 = vmatmul.msk.f32.gmra.mxu0 %vm76_vm0, %v60_v24  ;;  %1793 = vmatmul.msk.f32.gmra.mxu1 %vm76_vm0, %v60_v24  ;;  %v378_v24 = vld [vmem:[%s3375_s2 + $0x28] sm:$0xff] }
  0x46   :  { %413 = vmatpush.msrb.mxu0 %v378_v24  ;;  %v1862_v24 = vld [vmem:[%s3375_s2 + $0x210] sm:$0xff] }
  0x48   :  { %414 = vmatpush.msrb.mxu0 %v377_v25 }
  0x4a   :  { %415 = vmatpush.msrb.mxu0 %v376_v26 }
  0x4c   :  { %416 = vmatpush.msrb.mxu0 %v375_v27  ;;  %v1898_v27 = vld [vmem:[%s3375_s2 + $0x318] sm:$0xff] }
  0x4d   :  { %1774 = vmatmul.msk.f32.gmra.mxu0 %vm76_vm0, %v61_v34  ;;  %1794 = vmatmul.msk.f32.gmra.mxu1 %vm76_vm0, %v61_v34  ;;  %v1940_v34 = vld [vmem:[%s3375_s2 + $0x438] sm:$0xff] }
  0x4e   :  { %417 = vmatpush.msrb.mxu0 %v374_v32  ;;  %883 = vmatpush.msrb.mxu1 %v1940_v34  ;;  %v1860_v32 = vld [vmem:[%s3375_s2 + $0x200] sm:$0xff]  ;;  %v1896_v34 = vld [vmem:[%s3375_s2 + $0x308] sm:$0xff] }
  0x50   :  { %418 = vmatpush.msrb.mxu0 %v373_v35  ;;  %884 = vmatpush.msrb.mxu1 %v1939_v44  ;;  %v1859_v35 = vld [vmem:[%s3375_s2 + $0x1f8] sm:$0xff]  ;;  %v1893_v44 = vld [vmem:[%s3375_s2 + $0x2f0] sm:$0xff] }
  0x52   :  { %798 = vmatpush.msra.mxu0 %v1922_v55  ;;  %885 = vmatpush.msrb.mxu1 %v1938_v59  ;;  %v1890_v55 = vld [vmem:[%s3375_s2 + $0x2d8] sm:$0xff]  ;;  %v1889_v59 = vld [vmem:[%s3375_s2 + $0x2d0] sm:$0xff] }
  0x54   :  { %799 = vmatpush.msra.mxu0 %v1921_v58  ;;  %886 = vmatpush.msrb.mxu1 %v1937_v17  ;;  %v1934_v58 = vld [vmem:[%s3375_s2 + $0x408] sm:$0xff] }
  0x55   :  { %1775 = vmatmul.msk.f32.gmra.mxu0 %vm76_vm0, %v62_v45  ;;  %1795 = vmatmul.msk.f32.gmra.mxu1 %vm76_vm0, %v62_v45  ;;  %v1843_v45 = vld [vmem:[%s3375_s2 + $0x190] sm:$0xff]  ;;  %v1992_v17 = vld [vmem:[%s3375_s2 + $0x5a8] sm:$0xff] }
  0x56   :  { %800 = vmatpush.msra.mxu0 %v1920_v5  ;;  %v1932_v5 = vld [vmem:[%s3375_s2 + $0x3f8] sm:$0xff] }
  0x58   :  { %801 = vmatpush.msra.mxu0 %v1919_v7 }
  0x5a   :  { %802 = vmatpush.msra.mxu0 %v1918_v15  ;;  %v1884_v15 = vld [vmem:[%s3375_s2 + $0x2a8] sm:$0xff] }
  0x5c   :  { %803 = vmatpush.msra.mxu0 %v1917_v19  ;;  %v1968_v19 = vld [vmem:[%s3375_s2 + $0x500] sm:$0xff] }
  0x5d   :  { %1776 = vmatmul.msk.f32.gmra.mxu0 %vm76_vm0, %v63_v56  ;;  %1796 = vmatmul.msk.f32.gmra.mxu1 %vm76_vm0, %v63_v56  ;;  %v1839_v56 = vld [vmem:[%s3375_s2 + $0x170] sm:$0xff] }
  0x5e   :  { %804 = vmatpush.msra.mxu0 %v1916_v22  ;;  %v1951_v22 = vld [vmem:[%s3375_s2 + $0x490] sm:$0x3] }
  0x65   :  { %1777 = vmatmul.msk.f32.gmra.mxu0 %vm76_vm0, %v64_v2  ;;  %1797 = vmatmul.msk.f32.gmra.mxu1 %vm76_vm0, %v64_v2  ;;  %v1837_v2 = vld [vmem:[%s3375_s2 + $0x160] sm:$0xff] }
  0x6d   :  { %1778 = vmatmul.msk.f32.gmra.mxu0 %vm76_vm0, %v65_v8  ;;  %1798 = vmatmul.msk.f32.gmra.mxu1 %vm76_vm0, %v65_v8  ;;  %v1835_v8 = vld [vmem:[%s3375_s2 + $0x150] sm:$0xff] }
  0x75   :  { %1779 = vmatmul.msk.f32.gmra.mxu0 %vm76_vm0, %v66_v16  ;;  %1799 = vmatmul.msk.f32.gmra.mxu1 %vm76_vm0, %v66_v16  ;;  %v1877_v16 = vld [vmem:[%s3375_s2 + $0x288] sm:$0xff] }
  0x7d   :  { %1780 = vmatmul.msk.f32.gmra.mxu0 %vm76_vm0, %v67_v23  ;;  %1800 = vmatmul.msk.f32.gmra.mxu1 %vm76_vm0, %v67_v23  ;;  %v1875_v23 = vld [vmem:[%s3375_s2 + $0x278] sm:$0xff] }
  0x82   :  { %v2548_v29 = vpop.f32.mrf.mxu0  ;;  %v231_v30 = vpop.f32.mrf.mxu1 }
  0x83   :  { %1809 = vmatmul.msk.f32.vlgmr.msrb.gmra.mxu2 %vm316_vm2, %v231_v30  ;;  %v1897_v30 = vld [vmem:[%s3375_s2 + $0x310] sm:$0xff] }
  0x84   :  { %561 = vmatpush.msrb.mxu2 %v1850_v28  ;;  %v1861_v28 = vld [vmem:[%s3375_s2 + $0x208] sm:$0xff] }
  0x85   :  { %1781 = vmatmul.msk.f32.gmra.mxu0 %vm76_vm0, %v68_v31  ;;  %1801 = vmatmul.msk.f32.gmra.mxu1 %vm76_vm0, %v68_v31  ;;  %v1936_v31 = vld [vmem:[%s3375_s2 + $0x418] sm:$0xff] }
  0x86   :  { %562 = vmatpush.msrb.mxu2 %v1849_v33  ;;  %v1914_v33 = vld [vmem:[%s3375_s2 + $0x380] sm:$0xff]  ;;  %887 = vmatpush.msrb.mxu1 %v1936_v31 }
  0x87   :  { %v1964_v31 = vld [vmem:[%s3375_s2 + $0x4e0] sm:$0xff] }
  0x88   :  { %563 = vmatpush.msrb.mxu2 %v1848_v36  ;;  %v1913_v36 = vld [vmem:[%s3375_s2 + $0x378] sm:$0xff] }
  0x8a   :  { %564 = vmatpush.msrb.mxu2 %v1847_v37  ;;  %v2577_v39 = vpop.f32.mrf.mxu0  ;;  %v234_v40 = vpop.f32.mrf.mxu1  ;;  %v1895_v37 = vld [vmem:[%s3375_s2 + $0x300] sm:$0xff] }
  0x8b   :  { %1810 = vmatmul.msk.f32.gmra.mxu2 %vm316_vm2, %v234_v40 }
  0x8c   :  { %565 = vmatpush.msrb.mxu2 %v1846_v38  ;;  %v1903_v38 = vld [vmem:[%s3375_s2 + $0x340] sm:$0x3] }
  0x8d   :  { %1782 = vmatmul.msk.f32.gmra.mxu0 %vm76_vm0, %v69_v41  ;;  %1802 = vmatmul.msk.f32.gmra.mxu1 %vm76_vm0, %v69_v41  ;;  %v1894_v41 = vld [vmem:[%s3375_s2 + $0x2f8] sm:$0xff] }
  0x8e   :  { %566 = vmatpush.msrb.mxu2 %v1845_v42  ;;  %v1912_v42 = vld [vmem:[%s3375_s2 + $0x370] sm:$0xff] }
  0x90   :  { %567 = vmatpush.msrb.mxu2 %v1844_v43  ;;  %v1902_v43 = vld [vmem:[%s3375_s2 + $0x338] sm:$0xff] }
  0x92   :  { %568 = vmatpush.msrb.mxu2 %v1843_v45  ;;  %v160_v48 = vpop.f32.mrf.mxu0  ;;  %v237_v49 = vpop.f32.mrf.mxu1  ;;  %v1911_v45 = vld [vmem:[%s3375_s2 + $0x368] sm:$0xff] }
  0x93   :  { %498 = vmatmul.f32.vlgmr.msrb.gmra.mxu3 %v160_v48  ;;  %1833 = vmatmul.msk.f32.vlgmr.msra.gmra.mxu2 %vm316_vm2, %v237_v49  ;;  %v1892_v48 = vld [vmem:[%s3375_s2 + $0x2e8] sm:$0xff]  ;;  %v1910_v49 = vld [vmem:[%s3375_s2 + $0x360] sm:$0xff] }
  0x94   :  { %569 = vmatpush.msrb.mxu2 %v1842_v46  ;;  %640 = vmatpush.msrb.mxu3 %v1874_v47  ;;  %v1935_v46 = vld [vmem:[%s3375_s2 + $0x410] sm:$0xff] }
  0x95   :  { %1783 = vmatmul.msk.f32.gmra.mxu0 %vm76_vm0, %v70_v50  ;;  %1803 = vmatmul.msk.f32.gmra.mxu1 %vm76_vm0, %v70_v50  ;;  %v1901_v47 = vld [vmem:[%s3375_s2 + $0x330] sm:$0xff]  ;;  %v1900_v50 = vld [vmem:[%s3375_s2 + $0x328] sm:$0xff] }
  0x96   :  { %570 = vmatpush.msrb.mxu2 %v1841_v51  ;;  %641 = vmatpush.msrb.mxu3 %v1873_v52  ;;  %v1891_v51 = vld [vmem:[%s3375_s2 + $0x2e0] sm:$0xff] }
  0x97   :  { %888 = vmatpush.msrb.mxu1 %v1935_v46  ;;  %v1899_v52 = vld [vmem:[%s3375_s2 + $0x320] sm:$0xff] }
  0x98   :  { %571 = vmatpush.msrb.mxu2 %v1840_v53  ;;  %642 = vmatpush.msrb.mxu3 %v1872_v54 }
  0x99   :  { %889 = vmatpush.msrb.mxu1 %v1934_v58  ;;  %v1957_v58 = vld [vmem:[%s3375_s2 + $0x4a8] sm:$0xff] }
  0x9a   :  { %572 = vmatpush.msrb.mxu2 %v1839_v56  ;;  %v163_v62 = vpop.f32.mrf.mxu0  ;;  %v240_v63 = vpop.f32.mrf.mxu1  ;;  %643 = vmatpush.msrb.mxu3 %v1871_v57  ;;  %v1927_v56 = vld [vmem:[%s3375_s2 + $0x3e8] sm:$0x3]  ;;  %v1909_v57 = vld [vmem:[%s3375_s2 + $0x358] sm:$0xff] }
  0x9b   :  { %501 = vmatmul.f32.gmra.mxu3 %v163_v62  ;;  %1834 = vmatmul.msk.f32.gmra.mxu2 %vm316_vm2, %v240_v63  ;;  %v1933_v62 = vld [vmem:[%s3375_s2 + $0x400] sm:$0xff]  ;;  %v1888_v63 = vld [vmem:[%s3375_s2 + $0x2c8] sm:$0xff] }
  0x9c   :  { %573 = vmatpush.msrb.mxu2 %v1838_v60  ;;  %644 = vmatpush.msrb.mxu3 %v1870_v61  ;;  %v1926_v60 = vld [vmem:[%s3375_s2 + $0x3e0] sm:$0xff]  ;;  %v1908_v61 = vld [vmem:[%s3375_s2 + $0x350] sm:$0xff] }
  0x9d   :  { %1784 = vmatmul.msk.f32.gmra.mxu0 %vm76_vm0, %v2645_v0  ;;  %1804 = vmatmul.msk.f32.gmra.mxu1 %vm76_vm0, %v2645_v0 }
  0x9e   :  { %574 = vmatpush.msrb.mxu2 %v1837_v2  ;;  %645 = vmatpush.msrb.mxu3 %v1869_v4  ;;  %v1925_v2 = vld [vmem:[%s3375_s2 + $0x3d8] sm:$0xff]  ;;  %v1907_v4 = vld [vmem:[%s3375_s2 + $0x348] sm:$0xff] }
  0x9f   :  { %890 = vmatpush.msrb.mxu1 %v1933_v62 }
  0xa0   :  { %575 = vmatpush.msrb.mxu2 %v1836_v6  ;;  %646 = vmatpush.msrb.mxu3 %v1868_v3  ;;  %v1887_v6 = vld [vmem:[%s3375_s2 + $0x2c0] sm:$0xff]  ;;  %v1924_v3 = vld [vmem:[%s3375_s2 + $0x3d0] sm:$0xff] }
  0xa1   :  { %891 = vmatpush.msrb.mxu1 %v1932_v5  ;;  %v2017_v5 = vld [vmem:[%s3375_s2 + $0x658] sm:$0xff] }
  0xa2   :  { %576 = vmatpush.msrb.mxu2 %v1835_v8  ;;  %v166_v12 = vpop.f32.mrf.mxu0  ;;  %v243_v1 = vpop.f32.mrf.mxu1  ;;  %647 = vmatpush.msrb.mxu3 %v1867_v9  ;;  %v1886_v9 = vld [vmem:[%s3375_s2 + $0x2b8] sm:$0xff] }
  0xa3   :  { %1857 = vmatmul.msk.f32.vlgmr.msra.gmra.mxu3 %vm316_vm2, %v243_v1  ;;  %577 = vmatmul.f32.vlgmr.msrb.gmra.mxu2 %v166_v12  ;;  %v1994_v12 = vld [vmem:[%s3375_s2 + $0x5b8] sm:$0xff]  ;;  %v1885_v1 = vld [vmem:[%s3375_s2 + $0x2b0] sm:$0xff] }
  0xa4   :  { %1880 = vmatpush.msk.msra.mxu2 %vm323_vm1, %v1879_v10  ;;  %648 = vmatpush.msrb.mxu3 %v1866_v11  ;;  %v1931_v10 = vld [vmem:[%s3375_s2 + $0x3f0] sm:$0xff]  ;;  %v1923_v11 = vld [vmem:[%s3375_s2 + $0x3c8] sm:$0xff] }
  0xa5   :  { %419 = vmatmul.f32.vlgmr.msrb.gmra.mxu0 %v2548_v29  ;;  %v1915_v29 = vld [vmem:[%s3375_s2 + $0x388] sm:$0xff]  ;;  %892 = vmatpush.msrb.mxu1 %v1931_v10  ;;  %v2014_v10 = vld [vmem:[%s3375_s2 + $0x640] sm:$0xff] }
  0xa6   :  { %675 = vmatpush.msra.mxu2 %v1878_v13  ;;  %649 = vmatpush.msrb.mxu3 %v1865_v14  ;;  %v1970_v13 = vld [vmem:[%s3375_s2 + $0x510] sm:$0xff] }
  0xa7   :  { %805 = vmatpush.msra.mxu0 %v1915_v29  ;;  %v1993_v14 = vld [vmem:[%s3375_s2 + $0x5b0] sm:$0xff] }
  0xa8   :  { %676 = vmatpush.msra.mxu2 %v1877_v16  ;;  %650 = vmatpush.msrb.mxu3 %v1864_v18  ;;  %v1969_v16 = vld [vmem:[%s3375_s2 + $0x508] sm:$0xff]  ;;  %v1883_v18 = vld [vmem:[%s3375_s2 + $0x2a0] sm:$0xff]  ;;  %v1989_v29 = vld [vmem:[%s3375_s2 + $0x590] sm:$0xff] }
  0xa9   :  { %806 = vmatpush.msra.mxu0 %v1914_v33 }
  0xaa   :  { %677 = vmatpush.msra.mxu2 %v1876_v20  ;;  %v169_v25 = vpop.f32.mrf.mxu0  ;;  %v246_v26 = vpop.f32.mrf.mxu1  ;;  %651 = vmatpush.msrb.mxu3 %v1863_v21 }
  0xab   :  { %1858 = vmatmul.msk.f32.gmra.mxu3 %vm316_vm2, %v246_v26  ;;  %580 = vmatmul.f32.gmra.mxu2 %v169_v25  ;;  %v1950_v25 = vld [vmem:[%s3375_s2 + $0x488] sm:$0xff]  ;;  %v1990_v26 = vld [vmem:[%s3375_s2 + $0x598] sm:$0xff] }
  0xac   :  { %678 = vmatpush.msra.mxu2 %v1875_v23  ;;  %652 = vmatpush.msrb.mxu3 %v1862_v24  ;;  %v1991_v23 = vld [vmem:[%s3375_s2 + $0x5a0] sm:$0xff]  ;;  %v1967_v24 = vld [vmem:[%s3375_s2 + $0x4f8] sm:$0xff] }
  0xad   :  { %422 = vmatmul.f32.gmra.mxu0 %v2577_v39 }
  0xae   :  { %719 = vmatpush.msrb.mxu2 %v1898_v27  ;;  %653 = vmatpush.msrb.mxu3 %v1861_v28  ;;  %v1966_v27 = vld [vmem:[%s3375_s2 + $0x4f0] sm:$0xff]  ;;  %v1949_v28 = vld [vmem:[%s3375_s2 + $0x480] sm:$0xff] }
  0xaf   :  { %807 = vmatpush.msra.mxu0 %v1913_v36  ;;  %v1963_v36 = vld [vmem:[%s3375_s2 + $0x4d8] sm:$0xff] }
  0xb0   :  { %720 = vmatpush.msrb.mxu2 %v1897_v30  ;;  %654 = vmatpush.msrb.mxu3 %v1860_v32  ;;  %v1965_v30 = vld [vmem:[%s3375_s2 + $0x4e8] sm:$0xff] }
  0xb1   :  { %808 = vmatpush.msra.mxu0 %v1912_v42  ;;  %v1961_v42 = vld [vmem:[%s3375_s2 + $0x4c8] sm:$0xff] }
  0xb2   :  { %721 = vmatpush.msrb.mxu2 %v1896_v34  ;;  %v172_v39 = vpop.f32.mrf.mxu0  ;;  %v249_v40 = vpop.f32.mrf.mxu1  ;;  %655 = vmatpush.msrb.mxu3 %v1859_v35  ;;  %v1948_v34 = vld [vmem:[%s3375_s2 + $0x478] sm:$0xff]  ;;  %v1988_v35 = vld [vmem:[%s3375_s2 + $0x588] sm:$0xff] }
  0xb3   :  { %656 = vmatmul.f32.vlgmr.msrb.gmra.mxu3 %v172_v39  ;;  %1881 = vmatmul.msk.f32.vlgmr.msra.gmra.mxu2 %vm316_vm2, %v249_v40  ;;  %v1962_v39 = vld [vmem:[%s3375_s2 + $0x4d0] sm:$0xff]  ;;  %v1975_v40 = vld [vmem:[%s3375_s2 + $0x538] sm:$0x3] }
  0xb4   :  { %722 = vmatpush.msrb.mxu2 %v1895_v37  ;;  %1904 = vmatpush.msk.msra.mxu3 %vm323_vm1, %v1903_v38  ;;  %v1947_v37 = vld [vmem:[%s3375_s2 + $0x470] sm:$0xff]  ;;  %v1987_v38 = vld [vmem:[%s3375_s2 + $0x580] sm:$0xff] }
  0xb5   :  { %809 = vmatpush.msra.mxu0 %v1911_v45  ;;  %v1973_v45 = vld [vmem:[%s3375_s2 + $0x528] sm:$0xff] }
  0xb6   :  { %723 = vmatpush.msrb.mxu2 %v1894_v41  ;;  %754 = vmatpush.msra.mxu3 %v1902_v43  ;;  %v1986_v41 = vld [vmem:[%s3375_s2 + $0x578] sm:$0xff]  ;;  %v1974_v43 = vld [vmem:[%s3375_s2 + $0x530] sm:$0xff] }
  0xb7   :  { %810 = vmatpush.msra.mxu0 %v1910_v49  ;;  %v1999_v49 = vld [vmem:[%s3375_s2 + $0x5e0] sm:$0x3] }
  0xb8   :  { %724 = vmatpush.msrb.mxu2 %v1893_v44  ;;  %755 = vmatpush.msra.mxu3 %v1901_v47  ;;  %v1960_v44 = vld [vmem:[%s3375_s2 + $0x4c0] sm:$0xff] }
  0xb9   :  { %811 = vmatpush.msra.mxu0 %v1909_v57  ;;  %2000 = vmatpush.msk.msra.mxu1 %vm323_vm1, %v1999_v49  ;;  %v1997_v57 = vld [vmem:[%s3375_s2 + $0x5d0] sm:$0xff]  ;;  %v2111_v49 = vld [vmem:[%s3376_s4] ss:$0 sm:$0xff] }
  0xba   :  { %725 = vmatpush.msrb.mxu2 %v1892_v48  ;;  %v175_v53 = vpop.f32.mrf.mxu0  ;;  %v252_v54 = vpop.f32.mrf.mxu1  ;;  %756 = vmatpush.msra.mxu3 %v1900_v50  ;;  %v1985_v48 = vld [vmem:[%s3375_s2 + $0x570] sm:$0xff]  ;;  %v1959_v50 = vld [vmem:[%s3375_s2 + $0x4b8] sm:$0xff] }
  0xbb   :  { %659 = vmatmul.f32.gmra.mxu3 %v175_v53  ;;  %1882 = vmatmul.msk.f32.gmra.mxu2 %vm316_vm2, %v252_v54  ;;  %v1998_v53 = vld [vmem:[%s3375_s2 + $0x5d8] sm:$0xff]  ;;  %v1958_v54 = vld [vmem:[%s3375_s2 + $0x4b0] sm:$0xff] }
  0xbc   :  { %726 = vmatpush.msrb.mxu2 %v1891_v51  ;;  %757 = vmatpush.msra.mxu3 %v1899_v52  ;;  %v1972_v51 = vld [vmem:[%s3375_s2 + $0x520] sm:$0xff]  ;;  %v1984_v52 = vld [vmem:[%s3375_s2 + $0x568] sm:$0xff] }
  0xbd   :  { %812 = vmatpush.msra.mxu0 %v1908_v61  ;;  %1070 = vmatpush.msra.mxu1 %v1998_v53 }
  0xbe   :  { %727 = vmatpush.msrb.mxu2 %v1890_v55  ;;  %1928 = vmatpush.msk.msrb.mxu3 %vm323_vm1, %v1927_v56  ;;  %v1971_v55 = vld [vmem:[%s3375_s2 + $0x518] sm:$0xff]  ;;  %v1983_v56 = vld [vmem:[%s3375_s2 + $0x560] sm:$0xff] }
  0xbf   :  { %813 = vmatpush.msra.mxu0 %v1907_v4  ;;  %1071 = vmatpush.msra.mxu1 %v1997_v57  ;;  %v1955_v4 = vld [vmem:[%s3375_s2 + $0x498] sm:$0xff] }
  0xc0   :  { %728 = vmatpush.msrb.mxu2 %v1889_v59  ;;  %833 = vmatpush.msrb.mxu3 %v1926_v60  ;;  %v1956_v59 = vld [vmem:[%s3375_s2 + $0x4a0] sm:$0xff] }
  0xc1   :  { %1035 = vmatpush.msrb.mxu0 %v1994_v12  ;;  %v2018_v60 = vld [vmem:[%s3375_s2 + $0x660] sm:$0xff] }
  0xc2   :  { %729 = vmatpush.msrb.mxu2 %v1888_v63  ;;  %834 = vmatpush.msrb.mxu3 %v1925_v2  ;;  %v178_v7 = vpop.f32.mrf.mxu0  ;;  %v255_v8 = vpop.f32.mrf.mxu1  ;;  %v1982_v63 = vld [vmem:[%s3375_s2 + $0x558] sm:$0xff]  ;;  %v1996_v2 = vld [vmem:[%s3375_s2 + $0x5c8] sm:$0xff] }
  0xc3   :  { %1905 = vmatmul.msk.f32.vlgmr.msra.gmra.mxu3 %vm316_vm2, %v255_v8  ;;  %1036 = vmatpush.msrb.mxu0 %v1993_v14  ;;  %v1980_v8 = vld [vmem:[%s3375_s2 + $0x548] sm:$0xff]  ;;  %v2012_v14 = vld [vmem:[%s3375_s2 + $0x630] sm:$0xff] }
  0xc4   :  { %730 = vmatpush.msrb.mxu2 %v1887_v6  ;;  %835 = vmatpush.msrb.mxu3 %v1924_v3  ;;  %v1981_v6 = vld [vmem:[%s3375_s2 + $0x550] sm:$0xff]  ;;  %v1995_v3 = vld [vmem:[%s3375_s2 + $0x5c0] sm:$0xff] }
  0xc5   :  { %1037 = vmatpush.msrb.mxu0 %v1992_v17  ;;  %1072 = vmatpush.msra.mxu1 %v1996_v2  ;;  %v344_v17 = vpop.f32.mrf.mxu2 }
  0xc6   :  { %731 = vmatpush.msrb.mxu2 %v1886_v9  ;;  %836 = vmatpush.msrb.mxu3 %v1923_v11  ;;  %v2015_v9 = vld [vmem:[%s3375_s2 + $0x648] sm:$0xff]  ;;  %v1979_v11 = vld [vmem:[%s3375_s2 + $0x540] sm:$0xff] }
  0xc7   :  { %1038 = vmatpush.msrb.mxu0 %v1991_v23  ;;  %1073 = vmatpush.msra.mxu1 %v1995_v3  ;;  %v2021_v23 = vld [vmem:[%s3375_s2 + $0x678] sm:$0xff] }
  0xc8   :  { %732 = vmatpush.msrb.mxu2 %v1885_v1  ;;  %956 = vmatpush.msra.mxu3 %v1970_v13  ;;  %v2013_v13 = vld [vmem:[%s3375_s2 + $0x638] sm:$0xff] }
  0xc9   :  { %1039 = vmatpush.msrb.mxu0 %v1990_v26  ;;  %v2020_v26 = vld [vmem:[%s3375_s2 + $0x670] sm:$0xff] }
  0xca   :  { %733 = vmatpush.msrb.mxu2 %v1884_v15  ;;  %957 = vmatpush.msra.mxu3 %v1969_v16  ;;  %v181_v20 = vpop.f32.mrf.mxu0  ;;  %v258_v21 = vpop.f32.mrf.mxu1  ;;  %v2023_v15 = vld [vmem:[%s3375_s2 + $0x688] sm:$0x3] }
  0xcb   :  { %1906 = vmatmul.msk.f32.gmra.mxu3 %vm316_vm2, %v258_v21  ;;  %1040 = vmatpush.msrb.mxu0 %v1989_v29  ;;  %v2011_v16 = vld [vmem:[%s3375_s2 + $0x628] sm:$0xff]  ;;  %v2022_v21 = vld [vmem:[%s3375_s2 + $0x680] sm:$0xff] }
  0xcc   :  { %734 = vmatpush.msrb.mxu2 %v1883_v18  ;;  %958 = vmatpush.msra.mxu3 %v1968_v19  ;;  %v2010_v18 = vld [vmem:[%s3375_s2 + $0x620] sm:$0xff] }
  0xcd   :  { %735 = vmatmul.f32.vlgmr.msrb.gmra.mxu2 %v178_v7  ;;  %1041 = vmatpush.msrb.mxu0 %v1988_v35  ;;  %v2016_v7 = vld [vmem:[%s3375_s2 + $0x650] sm:$0xff]  ;;  %v367_v35 = vpop.f32.mrf.mxu3 }
  0xce   :  { %1952 = vmatpush.msk.msra.mxu2 %vm323_vm1, %v1951_v22  ;;  %959 = vmatpush.msra.mxu3 %v1967_v24  ;;  %v2009_v22 = vld [vmem:[%s3375_s2 + $0x618] sm:$0xff]  ;;  %v2008_v24 = vld [vmem:[%s3375_s2 + $0x610] sm:$0xff] }
  0xcf   :  { %1042 = vmatpush.msrb.mxu0 %v1987_v38 }
  0xd0   :  { %912 = vmatpush.msra.mxu2 %v1950_v25  ;;  %960 = vmatpush.msra.mxu3 %v1966_v27  ;;  %v2007_v25 = vld [vmem:[%s3375_s2 + $0x608] sm:$0xff] }
  0xd1   :  { %1043 = vmatpush.msrb.mxu0 %v1986_v41  ;;  %v2019_v27 = vld [vmem:[%s3375_s2 + $0x668] sm:$0xff] }
  0xd2   :  { %913 = vmatpush.msra.mxu2 %v1949_v28  ;;  %v184_v32 = vpop.f32.mrf.mxu0  ;;  %v261_v33 = vpop.f32.mrf.mxu1  ;;  %961 = vmatpush.msra.mxu3 %v1965_v30  ;;  %v2006_v28 = vld [vmem:[%s3375_s2 + $0x600] sm:$0xff] }
  0xd3   :  { %814 = vmatmul.f32.vlgmr.msra.gmra.mxu0 %v184_v32  ;;  %1929 = vmatmul.msk.f32.vlgmr.msrb.gmra.mxu3 %vm316_vm2, %v261_v33  ;;  %v347_v32 = vpop.f32.mrf.mxu2  ;;  %v2004_v33 = vld [vmem:[%s3375_s2 + $0x5f0] sm:$0xff] }
  0xd4   :  { %962 = vmatpush.msra.mxu3 %v1964_v31  ;;  %914 = vmatpush.msra.mxu2 %v1948_v34  ;;  %v2005_v31 = vld [vmem:[%s3375_s2 + $0x5f8] sm:$0xff]  ;;  %v2003_v34 = vld [vmem:[%s3375_s2 + $0x5e8] sm:$0xff] }
  0xd5   :  { %738 = vmatmul.f32.gmra.mxu2 %v181_v20  ;;  %1044 = vmatpush.msrb.mxu0 %v1985_v48  ;;  %v370_v41 = vpop.f32.mrf.mxu3 }
  0xd6   :  { %963 = vmatpush.msra.mxu3 %v1963_v36  ;;  %915 = vmatpush.msra.mxu2 %v1947_v37 }
  0xd7   :  { %1045 = vmatpush.msrb.mxu0 %v1984_v52  ;;  %v345_v52 = vadd.f32 %v2111_v49, %v344_v17 }
  0xd8   :  { %964 = vmatpush.msra.mxu3 %v1962_v39  ;;  %1976 = vmatpush.msk.msrb.mxu2 %vm323_vm1, %v1975_v40 }
  0xd9   :  { %1046 = vmatpush.msrb.mxu0 %v1983_v56 }
  0xda   :  { %v187_v46 = vpop.f32.mrf.mxu0  ;;  %v264_v47 = vpop.f32.mrf.mxu1  ;;  %965 = vmatpush.msra.mxu3 %v1961_v42  ;;  %991 = vmatpush.msrb.mxu2 %v1974_v43 }
  0xdb   :  { %817 = vmatmul.f32.gmra.mxu0 %v187_v46  ;;  %1930 = vmatmul.msk.f32.gmra.mxu3 %vm316_vm2, %v264_v47 }
  0xdc   :  { %966 = vmatpush.msra.mxu3 %v1960_v44  ;;  %992 = vmatpush.msrb.mxu2 %v1973_v45 }
  0xdd   :  { %1047 = vmatpush.msrb.mxu0 %v1982_v63 }
  0xde   :  { %967 = vmatpush.msra.mxu3 %v1959_v50  ;;  %993 = vmatpush.msrb.mxu2 %v1972_v51 }
  0xdf   :  { %1048 = vmatpush.msrb.mxu0 %v1981_v6 }
  0xe0   :  { %968 = vmatpush.msra.mxu3 %v1958_v54  ;;  %994 = vmatpush.msrb.mxu2 %v1971_v55  ;;  %v368_v54 = vadd.f32 %v367_v35, %v345_v52 }
  0xe1   :  { %1049 = vmatpush.msrb.mxu0 %v1980_v8 }
  0xe2   :  { %v190_v61 = vpop.f32.mrf.mxu0  ;;  %v267_v62 = vpop.f32.mrf.mxu1  ;;  %969 = vmatpush.msra.mxu3 %v1957_v58 }
  0xe3   :  { %893 = vmatmul.f32.vlgmr.msrb.gmra.mxu1 %v190_v61  ;;  %1953 = vmatmul.msk.f32.vlgmr.msra.gmra.mxu2 %vm316_vm2, %v267_v62 }
  0xe4   :  { %970 = vmatpush.msra.mxu3 %v1956_v59  ;;  %1114 = vmatpush.msra.mxu2 %v2018_v60  ;;  %v348_v59 = vadd.f32 %v2111_v49, %v347_v32 }
  0xe5   :  { %1050 = vmatpush.msrb.mxu0 %v1979_v11  ;;  %2024 = vmatpush.msk.msrb.mxu1 %vm323_vm1, %v2023_v15 }
  0xe6   :  { %971 = vmatpush.msra.mxu3 %v1955_v4  ;;  %1115 = vmatpush.msra.mxu2 %v2017_v5  ;;  %v371_v4 = vadd.f32 %v370_v41, %v348_v59 }
  0xe7   :  { %1149 = vmatpush.msrb.mxu1 %v2022_v21  ;;  %v1244_v21 = vld [vmem:[%s3377_s6 + $0x18] sm:$0xff] }
  0xe8   :  { %1116 = vmatpush.msra.mxu2 %v2016_v7 }
  0xe9   :  { %1150 = vmatpush.msrb.mxu1 %v2021_v23  ;;  %v1243_v23 = vld [vmem:[%s3377_s6 + $0x10] sm:$0xff] }
  0xea   :  { %v193_v12 = vpop.f32.mrf.mxu0  ;;  %v270_v1 = vpop.f32.mrf.mxu1  ;;  %1117 = vmatpush.msra.mxu2 %v2015_v9 }
  0xeb   :  { %896 = vmatmul.f32.gmra.mxu1 %v193_v12  ;;  %1954 = vmatmul.msk.f32.gmra.mxu2 %vm316_vm2, %v270_v1 }
  0xec   :  { %1118 = vmatpush.msra.mxu2 %v2014_v10  ;;  %1151 = vmatpush.msrb.mxu1 %v2020_v26  ;;  %v1242_v26 = vld [vmem:[%s3377_s6 + $0x8] sm:$0xff] }
  0xee   :  { %1119 = vmatpush.msra.mxu2 %v2013_v13  ;;  %1152 = vmatpush.msrb.mxu1 %v2019_v27  ;;  %v1241_v27 = vld [vmem:[%s3377_s6] sm:$0xff] }
  0xf0   :  { %1120 = vmatpush.msra.mxu2 %v2012_v14 }
  0xf2   :  { %v196_v19 = vpop.f32.mrf.mxu0  ;;  %v273_v20 = vpop.f32.mrf.mxu1  ;;  %1121 = vmatpush.msra.mxu2 %v2011_v16 }
  0xf3   :  { %972 = vmatmul.f32.vlgmr.msra.gmra.mxu3 %v196_v19  ;;  %1977 = vmatmul.msk.f32.vlgmr.msrb.gmra.mxu2 %vm316_vm2, %v273_v20 }
  0xf4   :  { %1122 = vmatpush.msra.mxu2 %v2010_v18 }
  0xf6   :  { %1123 = vmatpush.msra.mxu2 %v2009_v22 }
  0xf8   :  { %1124 = vmatpush.msra.mxu2 %v2008_v24 }
  0xfa   :  { %v199_v29 = vpop.f32.mrf.mxu0  ;;  %v276_v30 = vpop.f32.mrf.mxu1  ;;  %1125 = vmatpush.msra.mxu2 %v2007_v25 }
  0xfb   :  { %975 = vmatmul.f32.gmra.mxu3 %v199_v29  ;;  %1978 = vmatmul.msk.f32.gmra.mxu2 %vm316_vm2, %v276_v30 }
  0xfc   :  { %1126 = vmatpush.msra.mxu2 %v2006_v28 }
  0xfe   :  { %1127 = vmatpush.msra.mxu2 %v2005_v31 }
 0x100   :  { %1128 = vmatpush.msra.mxu2 %v2004_v33 }
 0x102   :  { %v202_v36 = vpop.f32.mrf.mxu0  ;;  %v279_v37 = vpop.f32.mrf.mxu1  ;;  %1129 = vmatpush.msra.mxu2 %v2003_v34 }
 0x103   :  { %1051 = vmatmul.f32.vlgmr.msrb.gmra.mxu0 %v202_v36  ;;  %2001 = vmatmul.msk.f32.vlgmr.msra.gmra.mxu1 %vm316_vm2, %v279_v37 }
 0x104   :  { %1268 = vmatpush.msrb.mxu2 %v1244_v21  ;;  %v2127_v21 = vld [vmem:[%s3373_s0 + $0x58] sm:$0xff] }
 0x106   :  { %v443_v38 = vpop.f32.mrf.mxu2  ;;  %1269 = vmatpush.msrb.mxu2 %v1243_v23  ;;  %v2129_v23 = vld [vmem:[%s3373_s0 + $0x68] sm:$0xff] }
 0x108   :  { %1270 = vmatpush.msrb.mxu2 %v1242_v26  ;;  %v1281_v26 = vld [vmem:[%s3379_s5 + $0x10] sm:$0xff] }
 0x10a   :  { %v205_v39 = vpop.f32.mrf.mxu0  ;;  %v282_v40 = vpop.f32.mrf.mxu1  ;;  %1271 = vmatpush.msrb.mxu2 %v1241_v27  ;;  %v1280_v27 = vld [vmem:[%s3379_s5 + $0x8] sm:$0xff] }
 0x10b   :  { %1054 = vmatmul.f32.gmra.mxu0 %v205_v39  ;;  %2002 = vmatmul.msk.f32.gmra.mxu1 %vm316_vm2, %v282_v40 }
 0x10e   :  { %v446_v42 = vpop.f32.mrf.mxu2 }
 0x112   :  { %v208_v43 = vpop.f32.mrf.mxu0  ;;  %v285_v44 = vpop.f32.mrf.mxu1 }
 0x113   :  { %1130 = vmatmul.f32.vlgmr.msra.gmra.mxu2 %v208_v43  ;;  %2025 = vmatmul.msk.f32.vlgmr.msrb.gmra.mxu1 %vm316_vm2, %v285_v44 }
 0x116   :  { %v499_v45 = vpop.f32.mrf.mxu3  ;;  %v522_v46 = vpop.f32.mrf.mxu2 }
 0x117   :  { %v523_v56 = vadd.f32 %v522_v46, %v499_v45 }
 0x11a   :  { %v211_v47 = vpop.f32.mrf.mxu0  ;;  %v288_v48 = vpop.f32.mrf.mxu1 }
 0x11b   :  { %1133 = vmatmul.f32.gmra.mxu2 %v211_v47  ;;  %2026 = vmatmul.msk.f32.gmra.mxu1 %vm316_vm2, %v288_v48 }
 0x11e   :  { %v502_v50 = vpop.f32.mrf.mxu3  ;;  %v525_v51 = vpop.f32.mrf.mxu2 }
 0x11f   :  { %v526_v6 = vadd.f32 %v525_v51, %v502_v50 }
 0x122   :  { %v420_v53 = vpop.f32.mrf.mxu0 }
 0x123   :  { %v444_v55 = vadd.f32 %v443_v38, %v420_v53 }
 0x125   :  { %v449_v57 = vadd.f32 %v444_v55, %v368_v54 }
 0x126   :  { %v601_v58 = vpop.f32.mrf.mxu3  ;;  %v578_v61 = vpop.f32.mrf.mxu2 }
 0x127   :  { %v528_v60 = vadd.f32 %v523_v56, %v449_v57  ;;  %v602_v62 = vadd.f32 %v601_v58, %v578_v61 }
 0x129   :  { %v607_v63 = vadd.f32 %v602_v62, %v528_v60 }
 0x12a   :  { %v423_v2 = vpop.f32.mrf.mxu0 }
 0x12b   :  { %v447_v5 = vadd.f32 %v446_v42, %v423_v2 }
 0x12d   :  { %v450_v3 = vadd.f32 %v447_v5, %v371_v4 }
 0x12e   :  { %v604_v7 = vpop.f32.mrf.mxu3  ;;  %v581_v9 = vpop.f32.mrf.mxu2 }
 0x12f   :  { %v529_v8 = vadd.f32 %v526_v6, %v450_v3  ;;  %v605_v10 = vadd.f32 %v604_v7, %v581_v9 }
 0x131   :  { %v608_v11 = vadd.f32 %v605_v10, %v529_v8 }
 0x136   :  { %v680_v12 = vpop.f32.mrf.mxu2  ;;  %v657_v1 = vpop.f32.mrf.mxu3 }
 0x137   :  { %v681_v33 = vadd.f32 %v680_v12, %v657_v1  ;;  %v2117_v12 = vld [vmem:[%s3373_s0 + $0x18] sm:$0xff]  ;;  %v2118_v1 = vld [vmem:[%s3373_s0 + $0x8] sm:$0xff] }
 0x139   :  { %v686_v37 = vadd.f32 %v681_v33, %v607_v63  ;;  %v2053_v33 = vld [vmem:[%s3379_s5 + $0x30] sm:$0xff] }
 0x13e   :  { %v683_v13 = vpop.f32.mrf.mxu2  ;;  %v660_v14 = vpop.f32.mrf.mxu3 }
 0x13f   :  { %v684_v43 = vadd.f32 %v683_v13, %v660_v14  ;;  %v2119_v13 = vld [vmem:[%s3373_s0 + $0x20] sm:$0xff]  ;;  %v2120_v14 = vld [vmem:[%s3373_s0 + $0x10] sm:$0xff] }
 0x141   :  { %v687_v50 = vadd.f32 %v684_v43, %v608_v11  ;;  %v2116_v11 = vld [vmem:[%s3373_s0] sm:$0xff]  ;;  %v2134_v43 = vld [vmem:[%s3373_s0 + $0x90] sm:$0xff] }
 0x146   :  { %v759_v16 = vpop.f32.mrf.mxu3 }
 0x14e   :  { %v762_v19 = vpop.f32.mrf.mxu3 }
 0x150   :  { %v736_v15 = vpop.f32.mrf.mxu2  ;;  %v815_v28 = vpop.f32.mrf.mxu0 }
 0x151   :  { %v760_v35 = vadd.f32 %v759_v16, %v736_v15  ;;  %v2121_v15 = vld [vmem:[%s3373_s0 + $0x28] sm:$0xff]  ;;  %v2122_v16 = vld [vmem:[%s3373_s0 + $0x30] sm:$0xff] }
 0x153   :  { %v765_v41 = vadd.f32 %v760_v35, %v686_v37  ;;  %v2132_v35 = vld [vmem:[%s3373_s0 + $0x80] sm:$0xff] }
 0x154   :  { %v2057_v37 = vld [vmem:[%s3379_s5 + $0x40] sm:$0xff] }
 0x156   :  { %v838_v24 = vpop.f32.mrf.mxu3 }
 0x157   :  { %v839_v38 = vadd.f32 %v838_v24, %v815_v28  ;;  %v1282_v24 = vld [vmem:[%s3379_s5 + $0x18] sm:$0xff]  ;;  %v1279_v28 = vld [vmem:[%s3379_s5] sm:$0xff] }
 0x158   :  { %v739_v17 = vpop.f32.mrf.mxu2  ;;  %v818_v32 = vpop.f32.mrf.mxu0 }
 0x159   :  { %v844_v44 = vadd.f32 %v839_v38, %v765_v41  ;;  %v763_v47 = vadd.f32 %v762_v19, %v739_v17  ;;  %v2123_v17 = vld [vmem:[%s3373_s0 + $0x38] sm:$0xff]  ;;  %v2125_v19 = vld [vmem:[%s3373_s0 + $0x48] sm:$0xff]  ;;  %v2051_v38 = vld [vmem:[%s3379_s5 + $0x20] sm:$0xff] }
 0x15a   :  { %v2065_v41 = vld [vmem:[%s3379_s5 + $0x70] sm:$0xff] }
 0x15b   :  { %v766_v55 = vadd.f32 %v763_v47, %v687_v50  ;;  %v2072_v47 = vld [vmem:[%s3379_s5 + $0x98] sm:$0xff]  ;;  %v2070_v50 = vld [vmem:[%s3379_s5 + $0x88] sm:$0xff] }
 0x15e   :  { %v841_v30 = vpop.f32.mrf.mxu3 }
 0x15f   :  { %v842_v51 = vadd.f32 %v841_v30, %v818_v32  ;;  %v2060_v30 = vld [vmem:[%s3379_s5 + $0x58] sm:$0xff]  ;;  %v2059_v32 = vld [vmem:[%s3379_s5 + $0x50] sm:$0xff] }
 0x160   :  { %v894_v18 = vpop.f32.mrf.mxu1  ;;  %1373 = vmatpush.msra.mxu0 %v2060_v30 }
 0x161   :  { %v845_v60 = vadd.f32 %v842_v51, %v766_v55  ;;  %v2069_v51 = vld [vmem:[%s3379_s5 + $0x80] sm:$0xff]  ;;  %v2077_v55 = vld [vmem:[%s3379_s5 + $0xb0] sm:$0xff] }
 0x162   :  { %1374 = vmatpush.msra.mxu0 %v2059_v32 }
 0x166   :  { %v917_v20 = vpop.f32.mrf.mxu2 }
 0x167   :  { %v918_v42 = vadd.f32 %v917_v20, %v894_v18  ;;  %v2124_v18 = vld [vmem:[%s3373_s0 + $0x40] sm:$0xff]  ;;  %v2126_v20 = vld [vmem:[%s3373_s0 + $0x50] sm:$0xff] }
 0x168   :  { %v897_v22 = vpop.f32.mrf.mxu1 }
 0x169   :  { %v923_v48 = vadd.f32 %v918_v42, %v844_v44  ;;  %v2064_v42 = vld [vmem:[%s3379_s5 + $0x68] sm:$0xff]  ;;  %v2063_v44 = vld [vmem:[%s3379_s5 + $0x60] sm:$0xff] }
 0x16e   :  { %v920_v25 = vpop.f32.mrf.mxu2 }
 0x16f   :  { %v921_v56 = vadd.f32 %v920_v25, %v897_v22  ;;  %v2128_v22 = vld [vmem:[%s3373_s0 + $0x60] sm:$0xff]  ;;  %v2130_v25 = vld [vmem:[%s3373_s0 + $0x70] sm:$0xff] }
 0x171   :  { %v924_v63 = vadd.f32 %v921_v56, %v845_v60  ;;  %v2076_v56 = vld [vmem:[%s3379_s5 + $0xa8] sm:$0xff]  ;;  %v2084_v60 = vld [vmem:[%s3379_s5 + $0xd8] sm:$0xff] }
 0x176   :  { %v996_v31 = vpop.f32.mrf.mxu2  ;;  %v973_v36 = vpop.f32.mrf.mxu3 }
 0x177   :  { %v997_v45 = vadd.f32 %v996_v31, %v973_v36  ;;  %v2054_v31 = vld [vmem:[%s3379_s5 + $0x38] sm:$0xff]  ;;  %v2052_v36 = vld [vmem:[%s3379_s5 + $0x28] sm:$0xff] }
 0x178   :  { %1337 = vmatpush.msra.mxu2 %v2054_v31 }
 0x179   :  { %v1002_v52 = vadd.f32 %v997_v45, %v923_v48  ;;  %v2071_v48 = vld [vmem:[%s3379_s5 + $0x90] sm:$0xff] }
 0x17a   :  { %1338 = vmatpush.msra.mxu2 %v2053_v33 }
 0x17c   :  { %1339 = vmatpush.msra.mxu2 %v2052_v36 }
 0x17e   :  { %v999_v39 = vpop.f32.mrf.mxu2  ;;  %v976_v53 = vpop.f32.mrf.mxu3  ;;  %1340 = vmatpush.msra.mxu2 %v2051_v38  ;;  %v2112_v38 = vld [vmem:[%s3378_s7] ss:$0 sm:$0xff] }
 0x17f   :  { %v1000_v61 = vadd.f32 %v999_v39, %v976_v53  ;;  %v2133_v39 = vld [vmem:[%s3373_s0 + $0x88] sm:$0xff] }
 0x180   :  { %v1075_v29 = vpop.f32.mrf.mxu1  ;;  %v1052_v40 = vpop.f32.mrf.mxu0 }
 0x181   :  { %v1076_v49 = vadd.f32 %v1075_v29, %v1052_v40  ;;  %v1003_v6 = vadd.f32 %v1000_v61, %v924_v63  ;;  %v2131_v29 = vld [vmem:[%s3373_s0 + $0x78] sm:$0xff]  ;;  %v2083_v61 = vld [vmem:[%s3379_s5 + $0xd0] sm:$0xff] }
 0x182   :  { %v2066_v40 = vld [vmem:[%s3379_s5 + $0x78] sm:$0xff] }
 0x183   :  { %v1081_v57 = vadd.f32 %v1076_v49, %v1002_v52 }
 0x188   :  { %v1078_v34 = vpop.f32.mrf.mxu1  ;;  %v1055_v59 = vpop.f32.mrf.mxu0 }
 0x189   :  { %v1079_v2 = vadd.f32 %v1078_v34, %v1055_v59  ;;  %v2058_v34 = vld [vmem:[%s3379_s5 + $0x48] sm:$0xff] }
 0x18a   :  { %1375 = vmatpush.msra.mxu0 %v2058_v34 }
 0x18b   :  { %v1082_v7 = vadd.f32 %v1079_v2, %v1003_v6  ;;  %v2081_v2 = vld [vmem:[%s3379_s5 + $0xc0] sm:$0xff]  ;;  %v2089_v6 = vld [vmem:[%s3379_s5 + $0xf0] sm:$0xff] }
 0x18c   :  { %1376 = vmatpush.msra.mxu0 %v2057_v37 }
 0x190   :  { %v1154_v46 = vpop.f32.mrf.mxu1 }
 0x196   :  { %v1131_v54 = vpop.f32.mrf.mxu2 }
 0x197   :  { %v1155_v58 = vadd.f32 %v1154_v46, %v1131_v54  ;;  %v2078_v54 = vld [vmem:[%s3379_s5 + $0xb8] sm:$0xff] }
 0x198   :  { %v1157_v5 = vpop.f32.mrf.mxu1  ;;  %1481 = vmatpush.msrb.mxu0 %v2078_v54 }
 0x199   :  { %v1160_v62 = vadd.f32 %v1155_v58, %v1081_v57  ;;  %v2075_v58 = vld [vmem:[%s3379_s5 + $0xa0] sm:$0xff] }
 0x19a   :  { %1482 = vmatpush.msrb.mxu0 %v2077_v55 }
 0x19b   :  { %v1162_v4 = vmax.f32 %v1160_v62, 0.0  ;;  %v2082_v62 = vld [vmem:[%s3379_s5 + $0xc8] sm:$0xff] }
 0x19c   :  { %1483 = vmatpush.msrb.mxu0 %v2076_v56 }
 0x19d   :  { %2047 = vmatmul.msk.f32.vlgmr.msrb.gmra.mxu2 %vm1249_vm3, %v1162_v4 }
 0x19e   :  { %v1134_v3 = vpop.f32.mrf.mxu2  ;;  %1445 = vmatpush.msrb.mxu2 %v2072_v47  ;;  %1484 = vmatpush.msrb.mxu0 %v2075_v58 }
 0x19f   :  { %v1158_v8 = vadd.f32 %v1157_v5, %v1134_v3  ;;  %v2090_v5 = vld [vmem:[%s3379_s5 + $0xf8] sm:$0xff]  ;;  %v2088_v3 = vld [vmem:[%s3379_s5 + $0xe8] sm:$0xff] }
 0x1a0   :  { %1446 = vmatpush.msrb.mxu2 %v2071_v48 }
 0x1a1   :  { %v1161_v9 = vadd.f32 %v1158_v8, %v1082_v7  ;;  %v2087_v8 = vld [vmem:[%s3379_s5 + $0xe0] sm:$0xff] }
 0x1a2   :  { %1447 = vmatpush.msrb.mxu2 %v2070_v50 }
 0x1a3   :  { %v1163_v10 = vmax.f32 %v1161_v9, 0.0 }
 0x1a4   :  { %1448 = vmatpush.msrb.mxu2 %v2069_v51 }
 0x1a5   :  { %1178 = vmatpush.msra.mxu1 %v1163_v10  ;;  %2109 = vmatpush.msrb.mxu3 %v1163_v10 }
 0x1a6   :  { %2048 = vmatmul.msk.f32.gmra.mxu2 %vm1249_vm3, %v1163_v10  ;;  %v2096_v10 = vld [vmem:[%s3379_s5 + $0x118] sm:$0xff] }
 0x1a7   :  { %1179 = vmatpush.msra.mxu1 %v1162_v4  ;;  %2110 = vmatpush.msrb.mxu3 %v1162_v4 }
 0x1a8   :  { %2027 = vmatmul.msk.f32.vlgmr.msra.gmra.mxu1 %vm76_vm0, %v2116_v11  ;;  %2030 = vmatmul.msk.f32.vlgmr.msrb.gmra.mxu3 %vm76_vm0, %v2117_v12  ;;  %v2095_v11 = vld [vmem:[%s3379_s5 + $0x110] sm:$0xff]  ;;  %v2094_v12 = vld [vmem:[%s3379_s5 + $0x108] sm:$0xff] }
 0x1a9   :  { %1301 = vmatpush.msrb.mxu1 %v1282_v24 }
 0x1ab   :  { %1302 = vmatpush.msrb.mxu1 %v1281_v26 }
 0x1ad   :  { %1303 = vmatpush.msrb.mxu1 %v1280_v27 }
 0x1af   :  { %1304 = vmatpush.msrb.mxu1 %v1279_v28 }
 0x1b0   :  { %2028 = vmatmul.msk.f32.gmra.mxu1 %vm76_vm0, %v2118_v1  ;;  %2031 = vmatmul.msk.f32.gmra.mxu3 %vm76_vm0, %v2119_v13  ;;  %v2093_v13 = vld [vmem:[%s3379_s5 + $0x100] sm:$0xff] }
 0x1b1   :  { %1409 = vmatpush.msra.mxu1 %v2066_v40  ;;  %v1667_v40 = vld [vmem:[%s3380_s9 + $0x18] sm:$0xff] }
 0x1b3   :  { %1410 = vmatpush.msra.mxu1 %v2065_v41  ;;  %v1666_v41 = vld [vmem:[%s3380_s9 + $0x10] sm:$0xff] }
 0x1b5   :  { %1411 = vmatpush.msra.mxu1 %v2064_v42 }
 0x1b7   :  { %1412 = vmatpush.msra.mxu1 %v2063_v44 }
 0x1b8   :  { %2029 = vmatmul.msk.f32.gmra.mxu1 %vm76_vm0, %v2120_v14  ;;  %2032 = vmatmul.msk.f32.gmra.mxu3 %vm76_vm0, %v2121_v15  ;;  %v2102_v15 = vld [vmem:[%s3379_s5 + $0x138] sm:$0xff] }
 0x1c0   :  { %2033 = vmatmul.msk.f32.gmra.mxu3 %vm76_vm0, %v2122_v16  ;;  %v2101_v16 = vld [vmem:[%s3379_s5 + $0x130] sm:$0xff] }
 0x1c8   :  { %2034 = vmatmul.msk.f32.gmra.mxu3 %vm76_vm0, %v2123_v17  ;;  %v2100_v17 = vld [vmem:[%s3379_s5 + $0x128] sm:$0xff] }
 0x1d0   :  { %2035 = vmatmul.msk.f32.gmra.mxu3 %vm76_vm0, %v2124_v18 }
 0x1d8   :  { %2036 = vmatmul.msk.f32.gmra.mxu3 %vm76_vm0, %v2125_v19  ;;  %v2099_v19 = vld [vmem:[%s3379_s5 + $0x120] sm:$0xff] }
 0x1e0   :  { %2037 = vmatmul.msk.f32.gmra.mxu3 %vm76_vm0, %v2126_v20 }
 0x1e8   :  { %2038 = vmatmul.msk.f32.gmra.mxu3 %vm76_vm0, %v2127_v21 }
 0x1f0   :  { %2039 = vmatmul.msk.f32.gmra.mxu3 %vm76_vm0, %v2128_v22 }
 0x1f8   :  { %2040 = vmatmul.msk.f32.gmra.mxu3 %vm76_vm0, %v2129_v23 }
 0x200   :  { %2041 = vmatmul.msk.f32.gmra.mxu3 %vm76_vm0, %v2130_v25 }
 0x208   :  { %2042 = vmatmul.msk.f32.gmra.mxu3 %vm76_vm0, %v2131_v29 }
 0x210   :  { %2043 = vmatmul.msk.f32.gmra.mxu3 %vm76_vm0, %v2132_v35 }
 0x218   :  { %2044 = vmatmul.msk.f32.gmra.mxu3 %vm76_vm0, %v2133_v39 }
 0x220   :  { %2045 = vmatmul.msk.f32.gmra.mxu3 %vm76_vm0, %v2134_v43  ;;  %v1273_v25 = vpop.f32.mrf.mxu2  ;;  %v1665_v43 = vld [vmem:[%s3380_s9 + $0x8] sm:$0xff] }
 0x221   :  { %v1274_v44 = vadd.f32 %v2112_v38, %v1273_v25  ;;  %v1728_v25 = vld [vmem:[%s3385_s13] sm:$0xff] }
 0x225   :  { %v1181_v45 = vpop.f32.mrf.mxu1 }
 0x226   :  { %2049 = vmatmul.msk.f32.vlgmr.msrb.gmra.mxu1 %vm1249_vm3, %v1181_v45 }
 0x227   :  { %1517 = vmatpush.msrb.mxu1 %v2084_v60 }
 0x228   :  { %2046 = vmatmul.msk.f32.gmra.mxu3 %vm76_vm0, %v2645_v0 }
 0x229   :  { %1518 = vmatpush.msrb.mxu1 %v2083_v61  ;;  %v1276_v27 = vpop.f32.mrf.mxu2 }
 0x22a   :  { %v1277_v45 = vadd.f32 %v2112_v38, %v1276_v27  ;;  %v2114_v27 = vld [vmem:[%s3384_s12] ss:$0 sm:$0xff] }
 0x22b   :  { %v1190_v46 = vpop.f32.mrf.mxu3  ;;  %1519 = vmatpush.msrb.mxu1 %v2082_v62 }
 0x22d   :  { %v1184_v49 = vpop.f32.mrf.mxu1  ;;  %1520 = vmatpush.msrb.mxu1 %v2081_v2 }
 0x22e   :  { %2050 = vmatmul.msk.f32.gmra.mxu1 %vm1249_vm3, %v1184_v49 }
 0x233   :  { %v1193_v0 = vpop.f32.mrf.mxu3 }
 0x234   :  { %2061 = vmatmul.msk.f32.vlgmr.msra.gmra.mxu0 %vm1249_vm3, %v1193_v0 }
 0x235   :  { %v1187_v52 = vpop.f32.mrf.mxu1  ;;  %1589 = vmatpush.msra.mxu0 %v2096_v10 }
 0x236   :  { %2055 = vmatmul.msk.f32.vlgmr.msra.gmra.mxu2 %vm1249_vm3, %v1187_v52 }
 0x237   :  { %1553 = vmatpush.msra.mxu2 %v2090_v5  ;;  %1590 = vmatpush.msra.mxu0 %v2095_v11 }
 0x239   :  { %1554 = vmatpush.msra.mxu2 %v2089_v6  ;;  %1591 = vmatpush.msra.mxu0 %v2094_v12 }
 0x23b   :  { %v1196_v53 = vpop.f32.mrf.mxu3  ;;  %1555 = vmatpush.msra.mxu2 %v2088_v3  ;;  %1592 = vmatpush.msra.mxu0 %v2093_v13  ;;  %v1699_v13 = vld [vmem:[%s3383_s11 + $0x18] sm:$0xff] }
 0x23c   :  { %2062 = vmatmul.msk.f32.gmra.mxu0 %vm1249_vm3, %v1196_v53 }
 0x23d   :  { %1556 = vmatpush.msra.mxu2 %v2087_v8 }
 0x23e   :  { %2056 = vmatmul.msk.f32.gmra.mxu2 %vm1249_vm3, %v1190_v46  ;;  %v1664_v46 = vld [vmem:[%s3380_s9] sm:$0xff] }
 0x243   :  { %v1199_v57 = vpop.f32.mrf.mxu3 }
 0x244   :  { %2067 = vmatmul.msk.f32.vlgmr.msra.gmra.mxu1 %vm1249_vm3, %v1199_v57 }
 0x245   :  { %1625 = vmatpush.msra.mxu1 %v2102_v15  ;;  %v1697_v15 = vld [vmem:[%s3383_s11 + $0x8] sm:$0xff] }
 0x247   :  { %1626 = vmatpush.msra.mxu1 %v2101_v16 }
 0x249   :  { %1627 = vmatpush.msra.mxu1 %v2100_v17  ;;  %v1696_v17 = vld [vmem:[%s3383_s11] sm:$0xff] }
 0x24b   :  { %v1202_v59 = vpop.f32.mrf.mxu3  ;;  %1628 = vmatpush.msra.mxu1 %v2099_v19  ;;  %v1730_v19 = vld [vmem:[%s3385_s13 + $0x10] sm:$0xff] }
 0x24c   :  { %2068 = vmatmul.msk.f32.gmra.mxu1 %vm1249_vm3, %v1202_v59 }
 0x253   :  { %v1205_v63 = vpop.f32.mrf.mxu3 }
 0x254   :  { %2073 = vmatmul.msk.f32.vlgmr.msrb.gmra.mxu2 %vm1249_vm3, %v1205_v63 }
 0x25b   :  { %v1208_v4 = vpop.f32.mrf.mxu3 }
 0x25c   :  { %2074 = vmatmul.msk.f32.gmra.mxu2 %vm1249_vm3, %v1208_v4 }
 0x263   :  { %v1211_v7 = vpop.f32.mrf.mxu3 }
 0x264   :  { %2079 = vmatmul.msk.f32.vlgmr.msrb.gmra.mxu0 %vm1249_vm3, %v1211_v7 }
 0x265   :  { %1687 = vmatpush.msrb.mxu0 %v1667_v40 }
 0x267   :  { %1688 = vmatpush.msrb.mxu0 %v1666_v41 }
 0x269   :  { %1689 = vmatpush.msrb.mxu0 %v1665_v43 }
 0x26b   :  { %v1214_v9 = vpop.f32.mrf.mxu3  ;;  %1690 = vmatpush.msrb.mxu0 %v1664_v46 }
 0x26c   :  { %2080 = vmatmul.msk.f32.gmra.mxu0 %vm1249_vm3, %v1214_v9 }
 0x273   :  { %v1217_v1 = vpop.f32.mrf.mxu3 }
 0x274   :  { %2085 = vmatmul.msk.f32.vlgmr.msrb.gmra.mxu1 %vm1249_vm3, %v1217_v1  ;;  %v1640_v1 = vld [vmem:[%s3381_s8] sm:$0x3] }
 0x275   :  { %1719 = vmatpush.msrb.mxu1 %v1699_v13 }
 0x27b   :  { %v1220_v14 = vpop.f32.mrf.mxu3 }
 0x27c   :  { %2086 = vmatmul.msk.f32.gmra.mxu1 %vm1249_vm3, %v1220_v14  ;;  %v1698_v14 = vld [vmem:[%s3383_s11 + $0x10] sm:$0xff] }
 0x27d   :  { %1720 = vmatpush.msrb.mxu1 %v1698_v14 }
 0x27f   :  { %1721 = vmatpush.msrb.mxu1 %v1697_v15 }
 0x281   :  { %1722 = vmatpush.msrb.mxu1 %v1696_v17 }
 0x283   :  { %v1223_v18 = vpop.f32.mrf.mxu3 }
 0x284   :  { %2091 = vmatmul.msk.f32.vlgmr.msra.gmra.mxu2 %vm1249_vm3, %v1223_v18  ;;  %v1731_v18 = vld [vmem:[%s3385_s13 + $0x18] sm:$0xff] }
 0x28b   :  { %v1226_v20 = vpop.f32.mrf.mxu3 }
 0x28c   :  { %2092 = vmatmul.msk.f32.gmra.mxu2 %vm1249_vm3, %v1226_v20  ;;  %v2113_v20 = vld [vmem:[%s3382_s10] ss:$0 sm:$0xff] }
 0x293   :  { %v1229_v21 = vpop.f32.mrf.mxu3 }
 0x294   :  { %2097 = vmatmul.msk.f32.vlgmr.msra.gmra.mxu0 %vm1249_vm3, %v1229_v21 }
 0x29b   :  { %v1232_v22 = vpop.f32.mrf.mxu3 }
 0x29c   :  { %2098 = vmatmul.msk.f32.gmra.mxu0 %vm1249_vm3, %v1232_v22 }
 0x2a3   :  { %v1235_v23 = vpop.f32.mrf.mxu3  ;;  %v1306_v26 = vpop.f32.mrf.mxu1 }
 0x2a4   :  { %2103 = vmatmul.msk.f32.vlgmr.msra.gmra.mxu1 %vm1249_vm3, %v1235_v23  ;;  %v1312_v47 = vadd.f32 %v1306_v26, %v1274_v44  ;;  %v20_v26 = vstv %s3386_s14 }
 0x2a5   :  { %21 = vst [vmem:[#allocation2] sm:$0x1] %v20_v26 }
 0x2ab   :  { %v1238_v24 = vpop.f32.mrf.mxu3  ;;  %v1309_v28 = vpop.f32.mrf.mxu1 }
 0x2ac   :  { %2104 = vmatmul.msk.f32.gmra.mxu1 %vm1249_vm3, %v1238_v24  ;;  %v1313_v48 = vadd.f32 %v1309_v28, %v1277_v45  ;;  %v1729_v24 = vld [vmem:[%s3385_s13 + $0x8] sm:$0xff] }
 0x2b1   :  { %v1378_v30 = vpop.f32.mrf.mxu0 }
 0x2b9   :  { %v1342_v29 = vpop.f32.mrf.mxu2  ;;  %v1381_v33 = vpop.f32.mrf.mxu0 }
 0x2ba   :  { %v1348_v49 = vadd.f32 %v1342_v29, %v1312_v47 }
 0x2bc   :  { %v1384_v53 = vadd.f32 %v1378_v30, %v1348_v49 }
 0x2c1   :  { %v1414_v31 = vpop.f32.mrf.mxu1  ;;  %v1345_v32 = vpop.f32.mrf.mxu2 }
 0x2c2   :  { %v1349_v50 = vadd.f32 %v1345_v32, %v1313_v48  ;;  %v1420_v55 = vadd.f32 %v1414_v31, %v1384_v53  ;;  %v2115_v31 = vld [vmem:[#allocation2] ss:$0 sm:$0xff] }
 0x2c4   :  { %v1385_v54 = vadd.f32 %v1381_v33, %v1349_v50 }
 0x2c9   :  { %v1417_v34 = vpop.f32.mrf.mxu1 }
 0x2ca   :  { %v1421_v56 = vadd.f32 %v1417_v34, %v1385_v54 }
 0x2d7   :  { %v1450_v35 = vpop.f32.mrf.mxu2 }
 0x2d8   :  { %v1456_v57 = vadd.f32 %v1450_v35, %v1420_v55 }
 0x2df   :  { %v1453_v39 = vpop.f32.mrf.mxu2 }
 0x2e0   :  { %v1457_v58 = vadd.f32 %v1453_v39, %v1421_v56 }
 0x2e1   :  { %v1486_v36 = vpop.f32.mrf.mxu0 }
 0x2e2   :  { %v1492_v60 = vadd.f32 %v1486_v36, %v1456_v57 }
 0x2e9   :  { %v1489_v42 = vpop.f32.mrf.mxu0 }
 0x2ea   :  { %v1493_v61 = vadd.f32 %v1489_v42, %v1457_v58 }
 0x2f1   :  { %v1522_v37 = vpop.f32.mrf.mxu1 }
 0x2f2   :  { %v1528_v63 = vadd.f32 %v1522_v37, %v1492_v60 }
 0x2f9   :  { %v1525_v0 = vpop.f32.mrf.mxu1 }
 0x2fa   :  { %v1529_v2 = vadd.f32 %v1525_v0, %v1493_v61 }
 0x307   :  { %v1558_v51 = vpop.f32.mrf.mxu2 }
 0x308   :  { %v1564_v5 = vadd.f32 %v1558_v51, %v1528_v63 }
 0x30f   :  { %v1561_v62 = vpop.f32.mrf.mxu2 }
 0x310   :  { %v1565_v6 = vadd.f32 %v1561_v62, %v1529_v2 }
 0x311   :  { %v1594_v52 = vpop.f32.mrf.mxu0 }
 0x312   :  { %v1600_v3 = vadd.f32 %v1594_v52, %v1564_v5 }
 0x319   :  { %v1597_v4 = vpop.f32.mrf.mxu0 }
 0x31a   :  { %v1601_v7 = vadd.f32 %v1597_v4, %v1565_v6 }
 0x321   :  { %v1630_v59 = vpop.f32.mrf.mxu1 }
 0x322   :  { %v1636_v9 = vadd.f32 %v1630_v59, %v1600_v3 }
 0x324   :  { %v1638_v12 = vmax.f32 %v1636_v9, 0.0 }
 0x329   :  { %v1633_v8 = vpop.f32.mrf.mxu1 }
 0x32a   :  { %v1637_v10 = vadd.f32 %v1633_v8, %v1601_v7 }
 0x32c   :  { %v1639_v11 = vmax.f32 %v1637_v10, 0.0 }
 0x32e   :  { %1658 = vmatpush.msrb.mxu2 %v1639_v11 }
 0x330   :  { %1659 = vmatpush.msrb.mxu2 %v1638_v12 }
 0x331   :  { %2105 = vmatmul.msk.f32.vlgmr.msrb.gmra.mxu2 %vm76_vm0, %v1640_v1 }
 0x332   :  { %1751 = vmatpush.msra.mxu2 %v1731_v18 }
 0x334   :  { %1752 = vmatpush.msra.mxu2 %v1730_v19 }
 0x336   :  { %1753 = vmatpush.msra.mxu2 %v1729_v24 }
 0x338   :  { %1754 = vmatpush.msra.mxu2 %v1728_v25 }
 0x3b4   :  { %v1661_v16 = vpop.f32.mrf.mxu2 }
 0x3b5   :  { %2106 = vmatmul.msk.f32.vlgmr.msrb.gmra.mxu0 %vm1249_vm3, %v1661_v16 }
 0x432   :  { %v1692_v21 = vpop.f32.mrf.mxu0 }
 0x433   :  { %v1693_v22 = vadd.f32 %v2113_v20, %v1692_v21 }
 0x435   :  { %v1695_v23 = vmax.f32 %v1693_v22, 0.0 }
 0x437   :  { %2107 = vmatmul.msk.f32.vlgmr.msrb.gmra.mxu1 %vm1249_vm3, %v1695_v23 }
 0x4b4   :  { %v1724_v28 = vpop.f32.mrf.mxu1 }
 0x4b5   :  { %v1725_v29 = vadd.f32 %v2114_v27, %v1724_v28 }
 0x4b7   :  { %v1727_v30 = vmax.f32 %v1725_v29, 0.0 }
 0x4b9   :  { %2108 = vmatmul.msk.f32.vlgmr.msra.gmra.mxu2 %vm1249_vm3, %v1727_v30 }
 0x53c   :  { %v1756_v32 = vpop.f32.mrf.mxu2 }
 0x53d   :  { %v1757_v33 = vadd.f32 %v2115_v31, %v1756_v32 }
 0x53f   :  { %1760 = vst.msk [vmem:[%s3387_s15] sm:$0x3] %vm1759_vm4, %v1757_v33 }

</bundles_post_ra>
